<compile_context>
chip_gen: v7x
topology: tpu7x:2x2x1
jax: 0.10.0
libtpu: 0.0.40
codegen_flags: <defaults>
</compile_context>

<pallas_src>
import numpy as np
import jax
import jax.numpy as jnp
from jax.experimental import pallas as pl
from jax.experimental.pallas import tpu as pltpu

OUT_HW = 224          # AdaptiveAvgPool2d target
C_HID = 32            # Conv2d(1, 32, (3,1)) hidden channels
C_OUT = 3             # Conv2d(32, 3, 1) output channels
BN_EPS = 1e-5

_ERF_P = 0.3275911
_ERF_A = (0.254829592, -0.284496736, 1.421413741, -1.453152027, 1.061405429)


def _gelu_erf(x):
    """Exact (erf) GELU; erf via Abramowitz-Stegun 7.1.26 (|err| < 1.5e-7).

    The divide runs as an approximate reciprocal on the EUP (free slot next to
    the exp); added error ~1e-4, negligible for the test tolerance.
    """
    z = x * 0.7071067811865476
    az = jnp.abs(z)
    t = pl.reciprocal(1.0 + _ERF_P * az, approx=True)
    a1, a2, a3, a4, a5 = _ERF_A
    poly = ((((a5 * t + a4) * t + a3) * t + a2) * t + a1) * t
    erf_abs = 1.0 - poly * jnp.exp(-az * az)
    erf_z = jnp.where(z < 0.0, -erf_abs, erf_abs)
    return 0.5 * x * (1.0 + erf_z)


def _adapter_kernel(xs_ref, w1_ref, b1_ref, w2_ref, b2_ref, selh_ref, selw_ref,
                    o_ref, lhs_ref):
    """BB batch elements per grid step -> one (BB*3*224, 224) output slab."""
    f32 = jnp.float32
    bb = xs_ref.shape[0]
    w1 = w1_ref[...]                    # (32, 3)   conv1 taps with BN folded in
    b1 = b1_ref[...]                    # (32, 1)   folded conv1 bias + BN shift
    w2 = w2_ref[...]                    # (3, 32)
    b2 = b2_ref[...]                    # (3, 1)
    selh = selh_ref[...]                # (224, LF) pool H bins on flat index
    selw = selw_ref[...]                # (LF, 224) pool W bins on flat index

    # Per-element conv1 + folded BN + GELU + conv2; scatter the pool LHS rows
    # (selh * y4[c]) into a single stacked (BB*3*224, LF) scratch so the
    # adaptive pool collapses into ONE MXU matmul and ONE dense store per step.
    for b in range(bb):
        xb = xs_ref[b]                  # (3, LF): tap k sees image row l+k-1
        # Conv2d(1, 32, (3,1), padding=(1,0)) + folded BatchNorm2d: VPU bcasts.
        y1 = (w1[:, 0:1] * xb[0:1, :]
              + w1[:, 1:2] * xb[1:2, :]
              + w1[:, 2:3] * xb[2:3, :]
              + b1)                     # (32, LF)
        # GELU (exact, erf-based).
        y3 = _gelu_erf(y1)
        # Conv2d(32, 3, kernel=1) == channel matmul on the MXU.
        y4 = jnp.dot(w2, y3, preferred_element_type=f32) + b2     # (3, LF)
        for c in range(C_OUT):
            row0 = (b * C_OUT + c) * OUT_HW
            lhs_ref[pl.ds(row0, OUT_HW), :] = selh * y4[c:c + 1, :]

    # AdaptiveAvgPool2d((224, 224)), separable on the flat spatial axis:
    #   out[(b,c,h), w] = sum_p selh[h,p] * y4[b,c,p] * selw[p,w]
    o_ref[...] = jnp.dot(lhs_ref[...], selw,
                         preferred_element_type=f32).astype(o_ref.dtype)


def _adaptive_pool_matrix(in_size, out_size):
    """Row-stochastic (out_size, in_size) matrix reproducing AdaptiveAvgPool1d bins."""
    mat = np.zeros((out_size, in_size), dtype=np.float32)
    for i in range(out_size):
        start = (i * in_size) // out_size
        end = -(-((i + 1) * in_size) // out_size)      # ceil
        mat[i, start:end] = 1.0 / (end - start)
    return mat


def _pick_batch_block(batch):
    """Largest BB in {4,3,2} dividing B while keeping >= 2 grid steps (v7x megacore)."""
    for bb in (4, 3, 2):
        if batch % bb == 0 and batch // bb >= 2:
            return bb
    return 1


def init_params(key):
    """Deterministic synthetic parameters matching the PyTorch module shapes."""
    ks = jax.random.split(key, 8)
    p = {
        "conv1_w": 0.3 * jax.random.normal(ks[0], (C_HID, 1, 3, 1), jnp.float32),
        "conv1_b": 0.1 * jax.random.normal(ks[1], (C_HID,), jnp.float32),
        "bn_gamma": 1.0 + 0.1 * jax.random.normal(ks[2], (C_HID,), jnp.float32),
        "bn_beta": 0.1 * jax.random.normal(ks[3], (C_HID,), jnp.float32),
        "bn_mean": 0.1 * jax.random.normal(ks[4], (C_HID,), jnp.float32),
        "bn_var": 0.5 + jnp.abs(0.5 * jax.random.normal(ks[5], (C_HID,), jnp.float32)),
        "conv2_w": 0.2 * jax.random.normal(ks[6], (C_OUT, C_HID, 1, 1), jnp.float32),
        "conv2_b": 0.1 * jax.random.normal(ks[7], (C_OUT,), jnp.float32),
    }
    # Snap to the bf16 grid (kept as f32) so the kernel-vs-reference comparison
    # is robust to MXU bf16 rounding of f32 matmul operands.
    return jax.tree_util.tree_map(
        lambda a: a.astype(jnp.bfloat16).astype(jnp.float32), p)


def time_series_image_adapter(x, params, out_dtype=jnp.float32):
    """Pallas forward: (B, L, F) time series -> (B, 3, 224, 224) image."""
    if x.ndim == 2:                       # mirrors the x.unsqueeze(-1) branch
        x = x[:, :, None]
    x = x.astype(jnp.float32)
    B, L, Fd = x.shape
    LF = L * Fd
    BB = _pick_batch_block(B)

    # Conv taps as pre-shifted rows (zero padded), flattened spatial p = l*F + f.
    xpad = jnp.pad(x, ((0, 0), (1, 1), (0, 0)))
    xs = jnp.stack([xpad[:, 0:L], xpad[:, 1:L + 1], xpad[:, 2:L + 2]], axis=1)
    xs = xs.reshape(B, 3, LF)                              # (B, 3, LF)

    # Fold BatchNorm2d (inference) + conv1 bias into the conv1 taps.
    bn_scale = params["bn_gamma"] / jnp.sqrt(params["bn_var"] + BN_EPS)
    bn_shift = params["bn_beta"] - params["bn_mean"] * bn_scale
    w1f = params["conv1_w"].reshape(C_HID, 3) * bn_scale[:, None]      # (32, 3)
    b1f = (params["conv1_b"] * bn_scale + bn_shift)[:, None]           # (32, 1)
    w2 = params["conv2_w"].reshape(C_OUT, C_HID)                       # (3, 32)
    b2 = params["conv2_b"][:, None]                                    # (3, 1)

    # AdaptiveAvgPool2d((224, 224)) separable bin matrices on the flat index.
    a_h = _adaptive_pool_matrix(L, OUT_HW)                 # (224, L)
    a_w = _adaptive_pool_matrix(Fd, OUT_HW)                # (224, F)
    selh = jnp.asarray(np.repeat(a_h, Fd, axis=1))         # (224, LF): a_h[h, p//F]
    selw = jnp.asarray(np.tile(np.ascontiguousarray(a_w.T), (L, 1)))   # (LF, 224): a_w[w, p%F]

    rows_per_step = BB * C_OUT * OUT_HW
    # Double-buffered output slab + stacked-LHS scratch (lane-padded) + inputs;
    # only raise the scoped-VMEM limit if we'd approach v5e's 16 MiB default.
    out_block_bytes = rows_per_step * OUT_HW * np.dtype(out_dtype).itemsize
    est_vmem = 2 * out_block_bytes + rows_per_step * 128 * 4 + (1 << 20)
    vmem_limit = est_vmem + (2 << 20) if est_vmem > (14 << 20) else None

    out_flat = pl.pallas_call(
        _adapter_kernel,
        out_shape=jax.ShapeDtypeStruct((B * C_OUT * OUT_HW, OUT_HW), out_dtype),
        grid=(B // BB,),
        in_specs=[
            pl.BlockSpec((BB, 3, LF), lambda i: (i, 0, 0)),            # conv taps
            pl.BlockSpec((C_HID, 3), lambda i: (0, 0)),                # folded conv1 w
            pl.BlockSpec((C_HID, 1), lambda i: (0, 0)),                # folded conv1 b
            pl.BlockSpec((C_OUT, C_HID), lambda i: (0, 0)),            # conv2 weight
            pl.BlockSpec((C_OUT, 1), lambda i: (0, 0)),                # conv2 bias
            pl.BlockSpec((OUT_HW, LF), lambda i: (0, 0)),              # pool H bins
            pl.BlockSpec((LF, OUT_HW), lambda i: (0, 0)),              # pool W bins
        ],
        out_specs=pl.BlockSpec((rows_per_step, OUT_HW), lambda i: (i, 0)),
        scratch_shapes=[pltpu.VMEM((rows_per_step, LF), jnp.float32)],
        compiler_params=pltpu.CompilerParams(
            dimension_semantics=("parallel",),
            vmem_limit_bytes=vmem_limit),
    )(xs, w1f, b1f, w2, b2, selh, selw)

    # (B*3*224, 224) -> (B, 3, 224, 224): contiguous row-major reshape (free).
    return out_flat.reshape(B, C_OUT, OUT_HW, OUT_HW)


def reference_forward(x, params):
    """Pure-JAX reference (inference-mode BN, exact GELU, exact adaptive pool)."""
    if x.ndim == 2:
        x = x[:, :, None]
    img = x[:, None, :, :].astype(jnp.float32)             # NCHW (B, 1, L, F)
    hi = jax.lax.Precision.HIGHEST
    y1 = jax.lax.conv_general_dilated(
        img, params["conv1_w"], (1, 1), ((1, 1), (0, 0)),
        dimension_numbers=("NCHW", "OIHW", "NCHW"), precision=hi)
    y1 = y1 + params["conv1_b"][None, :, None, None]
    sc = params["bn_gamma"] / jnp.sqrt(params["bn_var"] + BN_EPS)
    sh = params["bn_beta"] - params["bn_mean"] * sc
    y2 = y1 * sc[None, :, None, None] + sh[None, :, None, None]
    y3 = jax.nn.gelu(y2, approximate=False)
    y4 = jax.lax.conv_general_dilated(
        y3, params["conv2_w"], (1, 1), ((0, 0), (0, 0)),
        dimension_numbers=("NCHW", "OIHW", "NCHW"), precision=hi)
    y4 = y4 + params["conv2_b"][None, :, None, None]
    _, _, L, Fd = y4.shape
    assert OUT_HW % L == 0 and OUT_HW % Fd == 0            # adaptive pool == repeat here
    return jnp.repeat(jnp.repeat(y4, OUT_HW // L, axis=2), OUT_HW // Fd, axis=3)


if __name__ == "__main__":
    B, L, Fd = 2, 8, 4            # batch=2, seq_length=8, num_features=4
    key = jax.random.PRNGKey(0)
    kx, kp = jax.random.split(key)
    x = jax.random.normal(kx, (B, L, Fd), jnp.float32)
    x = x.astype(jnp.bfloat16).astype(jnp.float32)         # snap (see init_params note)
    params = init_params(kp)

    out = jax.block_until_ready(time_series_image_adapter(x, params))
    assert out.shape == (B, C_OUT, OUT_HW, OUT_HW) and out.dtype == jnp.float32

    ref = jax.block_until_ready(reference_forward(x, params))
    np.testing.assert_allclose(np.asarray(out), np.asarray(ref), rtol=5e-2, atol=5e-2)

    print("KERNEL_OK")
</pallas_src>

<mosaic_0001>
module attributes {stable_mosaic.version = 11 : i64} {
  func.func @_adapter_kernel(%arg0: i32, %arg1: memref<1x3x32xf32, #tpu.memory_space<vmem>>, %arg2: memref<32x3xf32, #tpu.memory_space<vmem>>, %arg3: memref<32x1xf32, #tpu.memory_space<vmem>>, %arg4: memref<3x32xf32, #tpu.memory_space<vmem>>, %arg5: memref<3x1xf32, #tpu.memory_space<vmem>>, %arg6: memref<224x32xf32, #tpu.memory_space<vmem>>, %arg7: memref<32x224xf32, #tpu.memory_space<vmem>>, %arg8: memref<672x224xf32, #tpu.memory_space<vmem>>, %arg9: memref<672x32xf32, #tpu.memory_space<vmem>>) attributes {dimension_semantics = [#tpu.dimension_semantics<parallel>], iteration_bounds = array<i64: 2>, scalar_prefetch = 0 : i64, scratch_operands = 1 : i64, tpu.core_type = #tpu.core_type<tc>, window_params = [{transform_indices = @transform_0, window_bounds = array<i64: 1, 3, 32>}, {pipeline_mode = #tpu.pipeline_mode<synchronous>, transform_indices = @transform_1, window_bounds = array<i64: 32, 3>}, {pipeline_mode = #tpu.pipeline_mode<synchronous>, transform_indices = @transform_2, window_bounds = array<i64: 32, 1>}, {pipeline_mode = #tpu.pipeline_mode<synchronous>, transform_indices = @transform_3, window_bounds = array<i64: 3, 32>}, {pipeline_mode = #tpu.pipeline_mode<synchronous>, transform_indices = @transform_4, window_bounds = array<i64: 3, 1>}, {pipeline_mode = #tpu.pipeline_mode<synchronous>, transform_indices = @transform_5, window_bounds = array<i64: 224, 32>}, {pipeline_mode = #tpu.pipeline_mode<synchronous>, transform_indices = @transform_6, window_bounds = array<i64: 32, 224>}, {transform_indices = @transform_7, window_bounds = array<i64: 672, 224>}]} {
    %c0 = arith.constant 0 : index
    %c0_0 = arith.constant 0 : index
    %0 = vector.load %arg2[%c0, %c0_0] : memref<32x3xf32, #tpu.memory_space<vmem>>, vector<32x3xf32>
    %c0_1 = arith.constant 0 : index
    %c0_2 = arith.constant 0 : index
    %1 = vector.load %arg3[%c0_1, %c0_2] : memref<32x1xf32, #tpu.memory_space<vmem>>, vector<32x1xf32>
    %c0_3 = arith.constant 0 : index
    %c0_4 = arith.constant 0 : index
    %2 = vector.load %arg4[%c0_3, %c0_4] : memref<3x32xf32, #tpu.memory_space<vmem>>, vector<3x32xf32>
    %c0_5 = arith.constant 0 : index
    %c0_6 = arith.constant 0 : index
    %3 = vector.load %arg5[%c0_5, %c0_6] : memref<3x1xf32, #tpu.memory_space<vmem>>, vector<3x1xf32>
    %c0_7 = arith.constant 0 : index
    %c0_8 = arith.constant 0 : index
    %4 = vector.load %arg6[%c0_7, %c0_8] : memref<224x32xf32, #tpu.memory_space<vmem>>, vector<224x32xf32>
    %c0_9 = arith.constant 0 : index
    %c0_10 = arith.constant 0 : index
    %5 = vector.load %arg7[%c0_9, %c0_10] : memref<32x224xf32, #tpu.memory_space<vmem>>, vector<32x224xf32>
    %c0_11 = arith.constant 0 : index
    %c0_12 = arith.constant 0 : index
    %c0_13 = arith.constant 0 : index
    %6 = vector.load %arg1[%c0_11, %c0_12, %c0_13] : memref<1x3x32xf32, #tpu.memory_space<vmem>>, vector<1x3x32xf32>
    %7 = vector.shape_cast %6 : vector<1x3x32xf32> to vector<3x32xf32>
    %8 = vector.extract_strided_slice %0 {offsets = [0, 0], sizes = [32, 1], strides = [1, 1]} : vector<32x3xf32> to vector<32x1xf32>
    %9 = vector.extract_strided_slice %7 {offsets = [0, 0], sizes = [1, 32], strides = [1, 1]} : vector<3x32xf32> to vector<1x32xf32>
    %10 = vector.broadcast %8 : vector<32x1xf32> to vector<32x32xf32>
    %11 = vector.broadcast %9 : vector<1x32xf32> to vector<32x32xf32>
    %12 = arith.mulf %10, %11 : vector<32x32xf32>
    %13 = vector.extract_strided_slice %0 {offsets = [0, 1], sizes = [32, 1], strides = [1, 1]} : vector<32x3xf32> to vector<32x1xf32>
    %14 = vector.extract_strided_slice %7 {offsets = [1, 0], sizes = [1, 32], strides = [1, 1]} : vector<3x32xf32> to vector<1x32xf32>
    %15 = vector.broadcast %13 : vector<32x1xf32> to vector<32x32xf32>
    %16 = vector.broadcast %14 : vector<1x32xf32> to vector<32x32xf32>
    %17 = arith.mulf %15, %16 : vector<32x32xf32>
    %18 = arith.addf %12, %17 : vector<32x32xf32>
    %19 = vector.extract_strided_slice %0 {offsets = [0, 2], sizes = [32, 1], strides = [1, 1]} : vector<32x3xf32> to vector<32x1xf32>
    %20 = vector.extract_strided_slice %7 {offsets = [2, 0], sizes = [1, 32], strides = [1, 1]} : vector<3x32xf32> to vector<1x32xf32>
    %21 = vector.broadcast %19 : vector<32x1xf32> to vector<32x32xf32>
    %22 = vector.broadcast %20 : vector<1x32xf32> to vector<32x32xf32>
    %23 = arith.mulf %21, %22 : vector<32x32xf32>
    %24 = arith.addf %18, %23 : vector<32x32xf32>
    %25 = vector.broadcast %1 : vector<32x1xf32> to vector<32x32xf32>
    %26 = arith.addf %24, %25 : vector<32x32xf32>
    %cst = arith.constant 0.707106769 : f32
    %27 = vector.broadcast %cst : f32 to vector<32x32xf32>
    %28 = arith.mulf %26, %27 : vector<32x32xf32>
    %29 = math.absf %28 : vector<32x32xf32>
    %cst_14 = arith.constant 0.327591091 : f32
    %30 = vector.broadcast %cst_14 : f32 to vector<32x32xf32>
    %31 = arith.mulf %30, %29 : vector<32x32xf32>
    %cst_15 = arith.constant 1.000000e+00 : f32
    %32 = vector.broadcast %cst_15 : f32 to vector<32x32xf32>
    %33 = arith.addf %32, %31 : vector<32x32xf32>
    %34 = tpu.reciprocal %33 {approx = true} : vector<32x32xf32> -> vector<32x32xf32>
    %cst_16 = arith.constant 1.06140542 : f32
    %35 = vector.broadcast %cst_16 : f32 to vector<32x32xf32>
    %36 = arith.mulf %35, %34 : vector<32x32xf32>
    %cst_17 = arith.constant -1.45315206 : f32
    %37 = vector.broadcast %cst_17 : f32 to vector<32x32xf32>
    %38 = arith.addf %36, %37 : vector<32x32xf32>
    %39 = arith.mulf %38, %34 : vector<32x32xf32>
    %cst_18 = arith.constant 1.42141378 : f32
    %40 = vector.broadcast %cst_18 : f32 to vector<32x32xf32>
    %41 = arith.addf %39, %40 : vector<32x32xf32>
    %42 = arith.mulf %41, %34 : vector<32x32xf32>
    %cst_19 = arith.constant -0.284496725 : f32
    %43 = vector.broadcast %cst_19 : f32 to vector<32x32xf32>
    %44 = arith.addf %42, %43 : vector<32x32xf32>
    %45 = arith.mulf %44, %34 : vector<32x32xf32>
    %cst_20 = arith.constant 0.254829586 : f32
    %46 = vector.broadcast %cst_20 : f32 to vector<32x32xf32>
    %47 = arith.addf %45, %46 : vector<32x32xf32>
    %48 = arith.mulf %47, %34 : vector<32x32xf32>
    %cst_21 = arith.constant 0.000000e+00 : f32
    %49 = vector.broadcast %cst_21 : f32 to vector<32x32xf32>
    %50 = arith.subf %49, %29 : vector<32x32xf32>
    %51 = arith.mulf %50, %29 : vector<32x32xf32>
    %52 = math.exp %51 : vector<32x32xf32>
    %53 = arith.mulf %48, %52 : vector<32x32xf32>
    %cst_22 = arith.constant 1.000000e+00 : f32
    %54 = vector.broadcast %cst_22 : f32 to vector<32x32xf32>
    %55 = arith.subf %54, %53 : vector<32x32xf32>
    %cst_23 = arith.constant 0.000000e+00 : f32
    %56 = vector.broadcast %cst_23 : f32 to vector<32x32xf32>
    %57 = arith.cmpf olt, %28, %56 : vector<32x32xf32>
    %cst_24 = arith.constant 0.000000e+00 : f32
    %58 = vector.broadcast %cst_24 : f32 to vector<32x32xf32>
    %59 = arith.subf %58, %55 : vector<32x32xf32>
    %60 = arith.select %57, %59, %55 : vector<32x32xi1>, vector<32x32xf32>
    %cst_25 = arith.constant 5.000000e-01 : f32
    %61 = vector.broadcast %cst_25 : f32 to vector<32x32xf32>
    %62 = arith.mulf %61, %26 : vector<32x32xf32>
    %cst_26 = arith.constant 1.000000e+00 : f32
    %63 = vector.broadcast %cst_26 : f32 to vector<32x32xf32>
    %64 = arith.addf %63, %60 : vector<32x32xf32>
    %65 = arith.mulf %62, %64 : vector<32x32xf32>
    %cst_27 = arith.constant dense<0.000000e+00> : vector<3x32xf32>
    %66 = tpu.matmul %2, %65, %cst_27 {dimension_numbers = #tpu.dot_dimension_numbers<[1], [0], [0], [1], [0, 0, 1, 1], [], []>} : vector<3x32xf32>, vector<32x32xf32>, vector<3x32xf32> -> vector<3x32xf32>
    %67 = vector.broadcast %3 : vector<3x1xf32> to vector<3x32xf32>
    %68 = arith.addf %66, %67 : vector<3x32xf32>
    %69 = vector.extract_strided_slice %68 {offsets = [0, 0], sizes = [1, 32], strides = [1, 1]} : vector<3x32xf32> to vector<1x32xf32>
    %70 = vector.broadcast %69 : vector<1x32xf32> to vector<224x32xf32>
    %71 = arith.mulf %4, %70 : vector<224x32xf32>
    %c0_28 = arith.constant 0 : index
    %c0_29 = arith.constant 0 : index
    %72 = vector.load %arg9[%c0_28, %c0_29] : memref<672x32xf32, #tpu.memory_space<vmem>>, vector<224x32xf32>
    tpu.vector_store %arg9[%c0_28, %c0_29], %71 {strides = array<i32>} : memref<672x32xf32, #tpu.memory_space<vmem>>, vector<224x32xf32>,
    %73 = vector.extract_strided_slice %68 {offsets = [1, 0], sizes = [1, 32], strides = [1, 1]} : vector<3x32xf32> to vector<1x32xf32>
    %74 = vector.broadcast %73 : vector<1x32xf32> to vector<224x32xf32>
    %75 = arith.mulf %4, %74 : vector<224x32xf32>
    %c224 = arith.constant 224 : index
    %c0_30 = arith.constant 0 : index
    %76 = vector.load %arg9[%c224, %c0_30] : memref<672x32xf32, #tpu.memory_space<vmem>>, vector<224x32xf32>
    tpu.vector_store %arg9[%c224, %c0_30], %75 {strides = array<i32>} : memref<672x32xf32, #tpu.memory_space<vmem>>, vector<224x32xf32>,
    %77 = vector.extract_strided_slice %68 {offsets = [2, 0], sizes = [1, 32], strides = [1, 1]} : vector<3x32xf32> to vector<1x32xf32>
    %78 = vector.broadcast %77 : vector<1x32xf32> to vector<224x32xf32>
    %79 = arith.mulf %4, %78 : vector<224x32xf32>
    %c448 = arith.constant 448 : index
    %c0_31 = arith.constant 0 : index
    %80 = vector.load %arg9[%c448, %c0_31] : memref<672x32xf32, #tpu.memory_space<vmem>>, vector<224x32xf32>
    tpu.vector_store %arg9[%c448, %c0_31], %79 {strides = array<i32>} : memref<672x32xf32, #tpu.memory_space<vmem>>, vector<224x32xf32>,
    %c0_32 = arith.constant 0 : index
    %c0_33 = arith.constant 0 : index
    %81 = vector.load %arg9[%c0_32, %c0_33] : memref<672x32xf32, #tpu.memory_space<vmem>>, vector<672x32xf32>
    %cst_34 = arith.constant dense<0.000000e+00> : vector<672x224xf32>
    %82 = tpu.matmul %81, %5, %cst_34 {dimension_numbers = #tpu.dot_dimension_numbers<[1], [0], [0], [1], [0, 0, 1, 1], [], []>} : vector<672x32xf32>, vector<32x224xf32>, vector<672x224xf32> -> vector<672x224xf32>
    %c0_35 = arith.constant 0 : index
    %c0_36 = arith.constant 0 : index
    %83 = vector.load %arg8[%c0_35, %c0_36] : memref<672x224xf32, #tpu.memory_space<vmem>>, vector<672x224xf32>
    tpu.vector_store %arg8[%c0_35, %c0_36], %82 {strides = array<i32>} : memref<672x224xf32, #tpu.memory_space<vmem>>, vector<672x224xf32>,
    return
  }
  func.func @transform_0(%arg0: i32) -> (i32, i32, i32) {
    %c0_i32 = arith.constant 0 : i32
    %c0_i32_0 = arith.constant 0 : i32
    %c0_i32_1 = arith.constant 0 : i32
    return %arg0, %c0_i32, %c0_i32_0 : i32, i32, i32
  }
  func.func @transform_1(%arg0: i32) -> (i32, i32) {
    %c0_i32 = arith.constant 0 : i32
    %c0_i32_0 = arith.constant 0 : i32
    %c0_i32_1 = arith.constant 0 : i32
    return %c0_i32, %c0_i32_0 : i32, i32
  }
  func.func @transform_2(%arg0: i32) -> (i32, i32) {
    %c0_i32 = arith.constant 0 : i32
    %c0_i32_0 = arith.constant 0 : i32
    %c0_i32_1 = arith.constant 0 : i32
    return %c0_i32, %c0_i32_0 : i32, i32
  }
  func.func @transform_3(%arg0: i32) -> (i32, i32) {
    %c0_i32 = arith.constant 0 : i32
    %c0_i32_0 = arith.constant 0 : i32
    %c0_i32_1 = arith.constant 0 : i32
    return %c0_i32, %c0_i32_0 : i32, i32
  }
  func.func @transform_4(%arg0: i32) -> (i32, i32) {
    %c0_i32 = arith.constant 0 : i32
    %c0_i32_0 = arith.constant 0 : i32
    %c0_i32_1 = arith.constant 0 : i32
    return %c0_i32, %c0_i32_0 : i32, i32
  }
  func.func @transform_5(%arg0: i32) -> (i32, i32) {
    %c0_i32 = arith.constant 0 : i32
    %c0_i32_0 = arith.constant 0 : i32
    %c0_i32_1 = arith.constant 0 : i32
    return %c0_i32, %c0_i32_0 : i32, i32
  }
  func.func @transform_6(%arg0: i32) -> (i32, i32) {
    %c0_i32 = arith.constant 0 : i32
    %c0_i32_0 = arith.constant 0 : i32
    %c0_i32_1 = arith.constant 0 : i32
    return %c0_i32, %c0_i32_0 : i32, i32
  }
  func.func @transform_7(%arg0: i32) -> (i32, i32) {
    %c0_i32 = arith.constant 0 : i32
    %c0_i32_0 = arith.constant 0 : i32
    return %arg0, %c0_i32 : i32, i32
  }
}

</mosaic_0001>

<bundles_post_ra>
// kernel: tpu_custom_call.1
= control target key start
LH: loop header
LB: loop body
LE: loop exit
PB: predicated region body
PF: predicated region fallthrough
CT: control target
= control target key end

     0   :  { %12 = vsyncpa [#allocation4], 0  ;;  %s3290_s0 = inlined_call_operand.vmem [shape: f32[2,3,32], index: 0, kind: input, shape index: {}]   ;;  %s3291_s1 = inlined_call_operand.vmem [shape: f32[32,3], index: 1, kind: input, shape index: {}]   ;;  %s3292_s2 = inlined_call_operand.vmem [shape: f32[32,1], index: 2, kind: input, shape index: {}]   ;;  %s3293_s3 = inlined_call_operand.hbm [shape: f32[3,32], index: 3, kind: input, shape index: {}]   ;;  %s3294_s4 = inlined_call_operand.vmem [shape: f32[3,1], index: 4, kind: input, shape index: {}]   ;;  %s3295_s5 = inlined_call_operand.vmem [shape: f32[224,32], index: 5, kind: input, shape index: {}]   ;;  %s3296_s6 = inlined_call_operand.hbm [shape: f32[32,224], index: 6, kind: input, shape index: {}]   ;;  %s3297_s7 = inlined_call_operand.vmem [shape: f32[1344,224], index: 7, kind: output, shape index: {}]  }
   0x1   :  { %13 = vsyncpa [#allocation6], 0  ;;  %s2296_s24 = smov 0  }
   0x2 LB: > { %s2302_s25 = sadd.s32 4294967295, %s2244_s24   ;;  %p1981_p0 = scmp.ge.s32.totalorder %s2244_s24, 1  ;;  %s2244_s24 = sphi %s2296_s24, %s19_s24  }
   0x3   : > { %p202_p1 = scmp.lt.s32.totalorder %s2244_s24, 3  ;;  %p3298_p2 = scmp.eq.s32.totalorder %s2302_s25, 0 }
   0x4   : > { %s2246_s26 = smov [#allocation3]   ;;  %s2247_s29 = smov [#allocation5]  }
   0x5   : > { %s221_s27 = sshll.u32 %s2246_s26, 4  ;;  %p2307_p3 = pnand %p1981_p0, %p202_p1  ;;  %s222_s27 = int_to_ptr.vmem [resolvable:$true] %s221_s27 }
   0x6   : > { %s237_s30 = sshll.u32 %s2247_s29, 4  ;;  %s2174_s11 = scalar_lea.hbm %s3293_s3, 64  ;;  %s2319_s30 = int_to_ptr.vmem [resolvable:$true] %s237_s30 }
   0x7   : > { %s3300_s28 = scalar_select %p2307_p3, 1, 0 }
   0x8   : > { %p2121_p4 = pneg %p2307_p3  ;;  %p2175_p6 = scmp.ne.s32.totalorder %s3293_s3, %s2174_s11 }
   0x9   : > { %p2181_p10 = scmp.lt.u32.totalorder %s2174_s11, %s3293_s3 }
   0xa   : > { %p2315_p5 = pnand %p3298_p2, %p2121_p4 }
   0xc   : > { %p2176_p7 = pneg %p2315_p5 }
   0xe   : > { %p2177_p8 = pnand %p2176_p7, %p2175_p6 }
  0x10   : > { %p2178_p9 = pneg %p2177_p8 }
  0x12   : > { %p2183_p11 = pnand %p2181_p10, %p2178_p9 }
  0x14   : > { %2186 = shalt.err (!%p2183_p11)
}
  0x15   : > { %s2187_s16 = scalar_lea.vmem %s222_s27, 64  ;;  %p2195_p1 = scmp.lt.s32.totalorder %s222_s27, %s222_s27 }
  0x16   : > { %p2188_p12 = scmp.ne.s32.totalorder %s222_s27, %s2187_s16  ;;  %p2196_p4 = scmp.lt.s32.totalorder %s2187_s16, %s2187_s16 }
  0x18   : > { %p2190_p13 = pnand %p2188_p12, %p2176_p7  ;;  %p2197_p2 = por %p2196_p4, %p2195_p1 }
  0x1a   : > { %p2191_p0 = pneg %p2190_p13 }
  0x1c   : > { %p2198_p3 = pnand %p2197_p2, %p2191_p0 }
  0x1e   : > { %2201 = shalt.err (!%p2198_p3)
}
  0x1f   : > { %2124 = dma.hbm_to_vmem [thread:$0]  (!%p2315_p5), %s3293_s3, 64, %s222_s27, [#allocation4]  }
  0x20   : > { %s2202_s21 = scalar_lea.hbm %s3296_s6, 1024 }
  0x21   : > { %p2203_p6 = scmp.ne.s32.totalorder %s3296_s6, %s2202_s21  ;;  %p2209_p3 = scmp.lt.u32.totalorder %s2202_s21, %s3296_s6 }
  0x23   : > { %p2205_p8 = pnand %p2203_p6, %p2176_p7 }
  0x25   : > { %p2206_p2 = pneg %p2205_p8 }
  0x27   : > { %p2211_p9 = pnand %p2209_p3, %p2206_p2 }
  0x29   : > { %2214 = shalt.err (!%p2211_p9)
}
  0x2a   : > { %s2215_s27 = scalar_lea.vmem %s2319_s30, 1024  ;;  %p2223_p13 = scmp.lt.s32.totalorder %s2319_s30, %s2319_s30 }
  0x2b   : > { %p2216_p10 = scmp.ne.s32.totalorder %s2319_s30, %s2215_s27  ;;  %p2224_p0 = scmp.lt.s32.totalorder %s2215_s27, %s2215_s27 }
  0x2d   : > { %p2218_p11 = pnand %p2216_p10, %p2176_p7  ;;  %p2225_p1 = por %p2224_p0, %p2223_p13 }
  0x2f   : > { %p2219_p12 = pneg %p2218_p11 }
  0x31   : > { %p2226_p4 = pnand %p2225_p1, %p2219_p12 }
  0x33   : > { %2229 = shalt.err (!%p2226_p4)
}
  0x34   : > { %s2248_s9 = smov 256   ;;  %s2249_s10 = smov 16  }
  0x35   : > { %2127 = dma.hbm_to_vmem [thread:$0]  (!%p2315_p5), %s3296_s6, 1024, %s2319_s30, [#allocation6], %s2248_s9, %s2248_s9, %s2249_s10  }
  0x36   : > { %p3302_p6 = scmp.ne.s32.totalorder %s3300_s28, 0 }
  0x37   : > { %p3303_p7 = scmp.eq.s32.totalorder (!%p3302_p6), %s2302_s25, 0 }
  0x38   : > { %260 = sbr.rel (%p3302_p6) target bundleno = 903 (0x387), region = 48 }
  0x3f   : > { %2235 = dma.done.wait (%p3303_p7), [#allocation4], 64   ;;  %p3304_p8 = pmov %p3303_p7 }
  0x40   : > { %p3305_p2 = pmov %p3303_p7 }
  0x41   : > { %2237 = vsyncadd (%p3304_p8), [#allocation4], 4294967232 }
  0x42   : > { %2239 = dma.done.wait (%p3305_p2), [#allocation6], 1024   ;;  %p3306_p3 = pmov %p3305_p2 }
  0x43   : > { %v2250_v0 = vmov 2   ;;  %v2251_v1 = vmov 1   ;;  %v307_v2 = vld [vmem:[%s3291_s1] sm:$0xff]  ;;  %v309_v3 = vld [vmem:[%s3291_s1 + $0x10] sm:$0xff]  ;;  %v308_v4 = vld [vmem:[%s3291_s1 + $0x8] sm:$0xff]  ;;  %v2252_v5 = vmov 0   ;;  %v374_v14 = vlaneseq }
  0x44   : > { %2241 = vsyncadd (%p3306_p3), [#allocation6], 4294966272  ;;  %2151 = vset.pattern.permute.xlu0 %v2250_v0  ;;  %2150 = vset.pattern.permute.xlu1 %v2251_v1  ;;  %v310_v6 = vld [vmem:[%s3291_s1 + $0x18] sm:$0xff]  ;;  %v312_v7 = vld [vmem:[%s3292_s2 + $0x8] sm:$0xff]  ;;  %v2253_v12 = vmov 0.0|0.0   ;;  %vm2254_vm0 = vmmov 0  }
  0x45   : > { %411 = vperm.xlu0 %2151, %v307_v2   ;;  %383 = vperm.xlu1 %2150, %v307_v2   ;;  %v316_v8 = vld [vmem:[%s3294_s4] sm:$0x7]  ;;  %v313_v10 = vld [vmem:[%s3292_s2 + $0x10] sm:$0xff]  ;;  %v314_v11 = vld [vmem:[%s3292_s2 + $0x18] sm:$0xff]  ;;  %v2255_v13 = vmov 0.0   ;;  %p296_p5 = scmp.lt.s32.totalorder %s2302_s25, 1 }
  0x46   : > { %v311_v9 = vld [vmem:[%s3292_s2] sm:$0xff]  ;;  %2095 = vmatprep.subr.bf16.mxu0 %v2253_v12  ;;  %2092 = vmatprep.mubr.msk.f32.mxu0 %vm2254_vm0, %v2255_v13  ;;  %v2410_v17 = vshrl.u32 %v374_v14, 7  ;;  %vm571_vm5 = vcmask 261120   ;;  %s300_s27 = smul.u32 84, %s2302_s25  ;;  %vm1731_vm6 = vcmask 785408  }
  0x47   : > { %1471 = vmatprep.mubr.f32.mxu1 %v2255_v13  ;;  %s297_s10 = scalar_select %p296_p5, %s2302_s25, 1 }
  0x48   : > { %v400_v20 = vsub.s32 1, %v2410_v17  ;;  %v376_v21 = vsub.s32 0, %v2410_v17  ;;  %v428_v25 = vsub.s32 2, %v2410_v17  ;;  %p301_p9 = scmp.lt.s32.totalorder %s300_s27, 167 }
  0x49   : > { %419 = vperm.xlu0 %2151, %v309_v3   ;;  %387 = vperm.xlu1 %2150, %v308_v4   ;;  %s1988_s11 = sshll.u32 %s297_s10, 2 }
  0x4a   : > { %s299_s8 = scalar_lea.vmem %s3290_s0, %s1988_s11  ;;  %s3308_s27 = smov (!%p301_p9, %s300_s27), 167 }
  0x4b   : > { %v353_v22 = vld [vmem:[%s299_s8] sm:$0x7]  ;;  %s2078_s9 = sshll.u32 %s3308_s27, 4 }
  0x4c   : > { %v401_v26 = vrot.slane %v353_v22, %v400_v20  ;;  %v377_v27 = vrot.slane %v353_v22, %v376_v21  ;;  %v429_v29 = vrot.slane %v353_v22, %v428_v25  ;;  %s3033_s12 = scalar_lea.vmem %s3297_s7, %s2078_s9 }
  0x4d   : > { %2155 = vset.pattern.permute.xlu0 %v2252_v5  ;;  %2152 = vset.pattern.permute.xlu1 %v2250_v0 }
  0x4e   : > { %356 = vperm.xlu0 %2155, %v307_v2   ;;  %415 = vperm.xlu1 %2152, %v308_v4  }
  0x52   : > { %361 = vperm.xlu0 %2155, %v308_v4   ;;  %2153 = vset.pattern.permute.xlu1 %v2252_v5 }
  0x53   : > { %366 = vperm.xlu1 %2153, %v309_v3  }
  0x56   : > { %371 = vperm.xlu0 %2155, %v310_v6  }
  0x57   : > { %2154 = vset.pattern.permute.xlu1 %v2251_v1 }
  0x58   : > { %391 = vperm.xlu1 %2154, %v309_v3  }
  0x5a   : > { %445 = vperm.xlu0 %2155, %v312_v7  }
  0x5c   : > { %395 = vperm.xlu1 %2154, %v310_v6  }
  0x5e   : > { %568 = vperm.xlu0 %2155, %v316_v8  }
  0x60   : > { %2156 = vset.pattern.permute.xlu1 %v2250_v0 }
  0x61   : > { %423 = vperm.xlu1 %2156, %v310_v6  }
  0x65   : > { %2157 = vset.pattern.permute.xlu1 %v2252_v5 }
  0x66   : > { %440 = vperm.xlu1 %2157, %v311_v9  }
  0x6a   : > { %450 = vperm.xlu1 %2157, %v313_v10  }
  0x6e   : > { %455 = vperm.xlu1 %2157, %v314_v11  }
  0xc4   : > { %v384_v15 = vpop.permute.xlu1 %383  ;;  %v412_v16 = vpop.permute.xlu0 %411 }
  0xc5   : > { %v402_v43 = vmul.f32 %v401_v26, %v384_v15  ;;  %v430_v45 = vmul.f32 %v429_v29, %v412_v16 }
  0xc8   : > { %v388_v18 = vpop.permute.xlu1 %387  ;;  %v420_v19 = vpop.permute.xlu0 %419 }
  0xc9   : > { %v403_v30 = vmul.f32 %v401_v26, %v388_v18  ;;  %v432_v55 = vmul.f32 %v429_v29, %v420_v19 }
  0xcd   : > { %v357_v23 = vpop.permute.xlu0 %356  ;;  %v416_v24 = vpop.permute.xlu1 %415 }
  0xce   : > { %v431_v35 = vmul.f32 %v429_v29, %v416_v24  ;;  %v378_v41 = vmul.f32 %v377_v27, %v357_v23 }
  0xd0   : > { %v406_v46 = vadd.f32 %v402_v43, %v378_v41 }
  0xd1   : > { %v362_v28 = vpop.permute.xlu0 %361 }
  0xd2   : > { %v379_v31 = vmul.f32 %v377_v27, %v362_v28  ;;  %v367_v32 = vpop.permute.xlu1 %366  ;;  %v434_v53 = vadd.f32 %v430_v45, %v406_v46 }
  0xd3   : > { %v380_v50 = vmul.f32 %v377_v27, %v367_v32 }
  0xd4   : > { %v407_v33 = vadd.f32 %v403_v30, %v379_v31 }
  0xd5   : > { %v372_v34 = vpop.permute.xlu0 %371 }
  0xd6   : > { %v435_v37 = vadd.f32 %v431_v35, %v407_v33  ;;  %v381_v57 = vmul.f32 %v377_v27, %v372_v34 }
  0xd7   : > { %v392_v36 = vpop.permute.xlu1 %391 }
  0xd8   : > { %v404_v47 = vmul.f32 %v401_v26, %v392_v36 }
  0xd9   : > { %v446_v38 = vpop.permute.xlu0 %445 }
  0xda   : > { %v2424_v39 = vadd.f32 %v446_v38, %v435_v37  ;;  %v408_v52 = vadd.f32 %v404_v47, %v380_v50 }
  0xdb   : > { %v396_v40 = vpop.permute.xlu1 %395 }
  0xdc   : > { %v2427_v42 = vmul.f32 0.70710677, %v2424_v39  ;;  %v405_v58 = vmul.f32 %v401_v26, %v396_v40  ;;  %v436_v60 = vadd.f32 %v432_v55, %v408_v52 }
  0xde   : > { %v467_v44 = vand.u32 2147483647, %v2427_v42  ;;  %v409_v1 = vadd.f32 %v405_v58, %v381_v57  ;;  %vm543_vm1 = vcmp.lt.f32.partialorder %v2427_v42, 0.0 }
  0xe0   : > { %v471_v48 = vmul.f32 0.3275911, %v467_v44  ;;  %v424_v49 = vpop.permute.xlu1 %423  ;;  %v519_v2 = vsub.f32 0.0, %v467_v44 }
  0xe1   : > { %v433_v61 = vmul.f32 %v429_v29, %v424_v49 }
  0xe2   : > { %v475_v51 = vadd.f32 1.0, %v471_v48  ;;  %v523_v14 = vmul.f32 %v519_v2, %v467_v44 }
  0xe3   : > { %v437_v5 = vadd.f32 %v433_v61, %v409_v1 }
  0xe4   : > { %2158 = vrcp.f32 %v475_v51  ;;  %v528_v24 = vmul.f32 1.442695, %v523_v14 }
  0xe5   : > { %v441_v54 = vpop.permute.xlu1 %440 }
  0xe6   : > { %v2430_v56 = vadd.f32 %v441_v54, %v434_v53 }
  0xe8   : > { %v2433_v59 = vmul.f32 0.70710677, %v2430_v56 }
  0xe9   : > { %v451_v62 = vpop.permute.xlu1 %450 }
  0xea   : > { %v466_v63 = vand.u32 2147483647, %v2433_v59  ;;  %v2436_v0 = vadd.f32 %v451_v62, %v436_v60  ;;  %vm542_vm2 = vcmp.lt.f32.partialorder %v2433_v59, 0.0 }
  0xec   : > { %v470_v3 = vmul.f32 0.3275911, %v466_v63  ;;  %v2439_v4 = vmul.f32 0.70710677, %v2436_v0  ;;  %v518_v28 = vsub.f32 0.0, %v466_v63 }
  0xed   : > { %v456_v6 = vpop.permute.xlu1 %455 }
  0xee   : > { %v2159_v7 = vpop.eup %2158  ;;  %v474_v8 = vadd.f32 1.0, %v470_v3  ;;  %v468_v9 = vand.u32 2147483647, %v2439_v4  ;;  %v2442_v10 = vadd.f32 %v456_v6, %v437_v5  ;;  %v522_v33 = vmul.f32 %v518_v28, %v466_v63 }
  0xef   : > { %v483_v11 = vmul.f32 1.0614054, %v2159_v7  ;;  %vm544_vm3 = vcmp.lt.f32.partialorder %v2439_v4, 0.0  ;;  %v315_v4 = vld [vmem:[#allocation3] sm:$0x7] }
  0xf0   : > { %2160 = vrcp.f32 %v474_v8  ;;  %v472_v15 = vmul.f32 0.3275911, %v468_v9  ;;  %v2445_v16 = vmul.f32 0.70710677, %v2442_v10  ;;  %v520_v34 = vsub.f32 0.0, %v468_v9 }
  0xf1   : > { %v487_v18 = vadd.f32 -1.4531521, %v483_v11  ;;  %v526_v41 = vmul.f32 1.442695, %v522_v33 }
  0xf2   : > { %v476_v19 = vadd.f32 1.0, %v472_v15  ;;  %v469_v22 = vand.u32 2147483647, %v2445_v16  ;;  %v524_v43 = vmul.f32 %v520_v34, %v468_v9  ;;  %vm545_vm4 = vcmp.lt.f32.partialorder %v2445_v16, 0.0  ;;  %v348_v16 = vld [vmem:[#allocation5 + $0x18] sm:$0xff] }
  0xf3   : > { %v491_v23 = vmul.f32 %v2159_v7, %v487_v18 }
  0xf4   : > { %2162 = vrcp.f32 %v476_v19  ;;  %v473_v26 = vmul.f32 0.3275911, %v469_v22  ;;  %v521_v45 = vsub.f32 0.0, %v469_v22  ;;  %v530_v51 = vmul.f32 1.442695, %v524_v43 }
  0xf5   : > { %v495_v27 = vadd.f32 1.4214138, %v491_v23  ;;  %2164 = vpow2.f32 %v528_v24 }
  0xf6   : > { %v477_v29 = vadd.f32 1.0, %v473_v26  ;;  %v525_v54 = vmul.f32 %v521_v45, %v469_v22 }
  0xf7   : > { %v499_v30 = vmul.f32 %v2159_v7, %v495_v27 }
  0xf8   : > { %2166 = vrcp.f32 %v477_v29  ;;  %v532_v1 = vmul.f32 1.442695, %v525_v54 }
  0xf9   : > { %v503_v31 = vadd.f32 -0.28449672, %v499_v30  ;;  %2168 = vpow2.f32 %v526_v41 }
  0xfa   : > { %v2161_v32 = vpop.eup %2160  ;;  %2170 = vpow2.f32 %v530_v51 }
  0xfb   : > { %v482_v35 = vmul.f32 1.0614054, %v2161_v32  ;;  %v507_v36 = vmul.f32 %v2159_v7, %v503_v31  ;;  %2172 = vpow2.f32 %v532_v1 }
  0xfd   : > { %v486_v37 = vadd.f32 -1.4531521, %v482_v35  ;;  %v511_v38 = vadd.f32 0.2548296, %v507_v36  ;;  %v555_v36 = vmul.f32 0.5, %v2424_v39 }
  0xfe   : > { %v2163_v40 = vpop.eup %2162 }
  0xff   : > { %v484_v44 = vmul.f32 1.0614054, %v2163_v40  ;;  %v490_v46 = vmul.f32 %v2161_v32, %v486_v37  ;;  %v515_v47 = vmul.f32 %v2159_v7, %v511_v38  ;;  %v2165_v50 = vpop.eup %2164  ;;  %v554_v37 = vmul.f32 0.5, %v2430_v56 }
 0x100   : > { %v556_v56 = vmul.f32 0.5, %v2436_v0  ;;  %v352_v0 = vld [vmem:[#allocation5 + $0x38] sm:$0xff] }
 0x101   : > { %v488_v48 = vadd.f32 -1.4531521, %v484_v44  ;;  %v494_v49 = vadd.f32 1.4214138, %v490_v46  ;;  %v535_v57 = vmul.f32 %v2165_v50, %v515_v47  ;;  %v557_v50 = vmul.f32 0.5, %v2442_v10 }
 0x102   : > { %v2167_v52 = vpop.eup %2166 }
 0x103   : > { %v492_v53 = vmul.f32 %v2163_v40, %v488_v48  ;;  %v498_v55 = vmul.f32 %v2161_v32, %v494_v49  ;;  %v485_v58 = vmul.f32 1.0614054, %v2167_v52  ;;  %v539_v3 = vsub.f32 1.0, %v535_v57  ;;  %v2169_v15 = vpop.eup %2168  ;;  %v345_v57 = vld [vmem:[#allocation5] sm:$0xff] }
 0x104   : > { %v2171_v28 = vpop.eup %2170 }
 0x105   : > { %v496_v60 = vadd.f32 1.4214138, %v492_v53  ;;  %v502_v61 = vadd.f32 -0.28449672, %v498_v55  ;;  %v489_v62 = vadd.f32 -1.4531521, %v485_v58  ;;  %v2173_v41 = vpop.eup %2172 }
 0x106   : > { %v547_v14 = vsub.f32 0.0, %v539_v3  ;;  %v346_v55 = vld [vmem:[#allocation5 + $0x8] sm:$0xff]  ;;  %v347_v58 = vld [vmem:[#allocation5 + $0x10] sm:$0xff] }
 0x107   : > { %v500_v63 = vmul.f32 %v2163_v40, %v496_v60  ;;  %v506_v2 = vmul.f32 %v2161_v32, %v502_v61  ;;  %v493_v5 = vmul.f32 %v2167_v52, %v489_v62  ;;  %v350_v60 = vld [vmem:[#allocation5 + $0x28] sm:$0xff]  ;;  %v2103_v61 = vpack.c.bf16 %v347_v58, %v345_v57  ;;  %v349_v62 = vld [vmem:[#allocation5 + $0x20] sm:$0xff] }
 0x108   : > { %v551_v27 = vsel %vm543_vm1, %v547_v14, %v539_v3  ;;  %v2105_v10 = vpack.c.bf16 %v352_v0, %v350_v60  ;;  %v2482_v14 = vld [vmem:[%s3295_s5 + $0x10] sm:$0xff] }
 0x109   : > { %v504_v6 = vadd.f32 -0.28449672, %v500_v63  ;;  %v510_v7 = vadd.f32 0.2548296, %v506_v2  ;;  %v497_v8 = vadd.f32 1.4214138, %v493_v5  ;;  %v569_v2 = vpop.permute.xlu0 %568 }
 0x10a   : > { %v559_v34 = vadd.f32 1.0, %v551_v27  ;;  %v351_v63 = vld [vmem:[#allocation5 + $0x30] sm:$0xff]  ;;  %v2462_v5 = vld [vmem:[%s3295_s5] sm:$0xff]  ;;  %v2520_v27 = vld [vmem:[%s3295_s5 + $0x28] sm:$0xff] }
 0x10b   : > { %v508_v9 = vmul.f32 %v2163_v40, %v504_v6  ;;  %v514_v11 = vmul.f32 %v2161_v32, %v510_v7  ;;  %v501_v18 = vmul.f32 %v2167_v52, %v497_v8  ;;  %v2107_v1 = vpack.c.bf16 %v351_v63, %v349_v62  ;;  %v2467_v6 = vld [vmem:[%s3295_s5 + $0x68] sm:$0xff] }
 0x10c   : > { %v563_v45 = vmul.f32 %v559_v34, %v555_v36  ;;  %v2472_v7 = vld [vmem:[%s3295_s5 + $0x8] sm:$0xff]  ;;  %v2557_v34 = vld [vmem:[%s3295_s5 + $0xa0] sm:$0xff] }
 0x10d   : > { %v512_v19 = vadd.f32 0.2548296, %v508_v9  ;;  %v534_v22 = vmul.f32 %v2169_v15, %v514_v11  ;;  %v505_v23 = vadd.f32 -0.28449672, %v501_v18  ;;  %v2477_v11 = vld [vmem:[%s3295_s5 + $0x70] sm:$0xff]  ;;  %v2487_v15 = vld [vmem:[%s3295_s5 + $0x78] sm:$0xff] }
 0x10e   : > { %v2492_v18 = vld [vmem:[%s3295_s5 + $0x18] sm:$0xff] }
 0x10f   : > { %v516_v24 = vmul.f32 %v2163_v40, %v512_v19  ;;  %v538_v26 = vsub.f32 1.0, %v534_v22  ;;  %v509_v29 = vmul.f32 %v2167_v52, %v505_v23  ;;  %v2497_v19 = vld [vmem:[%s3295_s5 + $0x80] sm:$0xff] }
 0x110   : > { %v2502_v22 = vld [vmem:[%s3295_s5 + $0x20] sm:$0xff] }
 0x111   : > { %v536_v30 = vmul.f32 %v2171_v28, %v516_v24  ;;  %v546_v31 = vsub.f32 0.0, %v538_v26  ;;  %v513_v33 = vadd.f32 0.2548296, %v509_v29  ;;  %v2525_v28 = vld [vmem:[%s3295_s5 + $0x90] sm:$0xff]  ;;  %v2539_v29 = vld [vmem:[%s3295_s5 + $0x98] sm:$0xff] }
 0x113   : > { %v540_v32 = vsub.f32 1.0, %v536_v30  ;;  %v550_v35 = vsel %vm542_vm2, %v546_v31, %v538_v26  ;;  %v517_v38 = vmul.f32 %v2167_v52, %v513_v33  ;;  %v2515_v26 = vld [vmem:[%s3295_s5 + $0x88] sm:$0xff]  ;;  %v2544_v30 = vld [vmem:[%s3295_s5 + $0x38] sm:$0xff] }
 0x114   : > { %v558_v42 = vadd.f32 1.0, %v550_v35  ;;  %v2567_v35 = vld [vmem:[%s3295_s5 + $0xa8] sm:$0xff] }
 0x115   : > { %v548_v40 = vsub.f32 0.0, %v540_v32  ;;  %v537_v43 = vmul.f32 %v2173_v41, %v517_v38  ;;  %v2580_v41 = vld [vmem:[%s3295_s5 + $0x48] sm:$0xff] }
 0x116   : > { %v562_v44 = vmul.f32 %v558_v42, %v554_v37 }
 0x117   : > { %v552_v46 = vsel %vm544_vm3, %v548_v40, %v540_v32  ;;  %v541_v47 = vsub.f32 1.0, %v537_v43  ;;  %v2562_v32 = vld [vmem:[%s3295_s5 + $0x40] sm:$0xff]  ;;  %v2585_v40 = vld [vmem:[%s3295_s5 + $0xb0] sm:$0xff] }
 0x118   : > { %v2096_v59 = vpack.c.bf16 %v563_v45, %v562_v44  ;;  %v560_v49 = vadd.f32 1.0, %v552_v46  ;;  %v2590_v43 = vld [vmem:[%s3295_s5 + $0x50] sm:$0xff] }
 0x119   : > { %v549_v48 = vsub.f32 0.0, %v541_v47 }
 0x11a   : > { %2097 = vmatpush3.bf16.msra.mxu0 %v2096_v59  ;;  %v564_v52 = vmul.f32 %v560_v49, %v556_v56  ;;  %v2607_v59 = vld [vmem:[%s3295_s5 + $0xb8] sm:$0xff]  ;;  %v2617_v49 = vld [vmem:[%s3295_s5 + $0xc0] sm:$0xff] }
 0x11b   : > { %2098 = vmatprep.subr.bf16.mxu0 %v2253_v12  ;;  %v553_v39 = vsel %vm545_vm4, %v549_v48, %v541_v47  ;;  %v2101_v12 = vpack.c.bf16 %v348_v16, %v346_v55  ;;  %v2612_v48 = vld [vmem:[%s3295_s5 + $0x58] sm:$0xff] }
 0x11c   : > { %v561_v51 = vadd.f32 1.0, %v553_v39 }
 0x11d   : > { %2109 = vmatprep.subr.bf16.mxu1 %v2101_v12 }
 0x11e   : > { %v565_v53 = vmul.f32 %v561_v51, %v557_v50  ;;  %2111 = vmatpush1.bf16.msra.mxu1 %v2103_v61 }
 0x11f   : > { %2110 = vmatprep.subr.bf16.mxu1 %v2105_v10 }
 0x120   : > { %v2099_v54 = vpack.c.bf16 %v565_v53, %v564_v52  ;;  %v2634_v52 = vld [vmem:[%s3295_s5 + $0x60] sm:$0xff]  ;;  %v2639_v53 = vld [vmem:[%s3295_s5 + $0xc8] sm:$0xff] }
 0x122   : > { %2100 = vmatpush3.bf16.msra.mxu0 %v2099_v54  ;;  %2112 = vmatpush1.bf16.msra.mxu1 %v2107_v1  ;;  %v2644_v54 = vld [vmem:[%s3295_s5 + $0xd0] sm:$0xff] }
 0x123   : > { %2102 = vmatprep.subr.bf16.mxu0 %v2101_v12  ;;  %v2661_v12 = vld [vmem:[%s3295_s5 + $0xd8] sm:$0xff] }
 0x125   : > { %2093 = vmatmul.mubr.msk.f32.vlgmr.msra.gmra.mrb[0].mxu0 %vm571_vm5, %v315_v4 }
 0x126   : > { %1225 = vmatprep.mubr.f32.mxu0 %v2255_v13  ;;  %2104 = vmatpush1.bf16.msra.mxu0 %v2103_v61 }
 0x127   : > { %2106 = vmatprep.subr.bf16.mxu0 %v2105_v10 }
 0x12a   : > { %2108 = vmatpush1.bf16.msra.mxu0 %v2107_v1 }
 0x1f8   : > { %v641_v3 = vpop.f32.mrb[0].mxu0 }
 0x1f9   : > { %v642_v8 = vadd.f32 %v641_v3, %v569_v2  ;;  %v2094_v9 = vpop.f32.mrb[1].mxu0 }
 0x1fb   : > { %v2506_v23 = vrot.slane %v642_v8, %v376_v21  ;;  %v2510_v24 = vrot.slane %v642_v8, %v400_v20  ;;  %v2529_v21 = vrot.slane %v642_v8, %v428_v25  ;;  %v2534_v20 = vld [vmem:[%s3295_s5 + $0x30] sm:$0xff] }
 0x1fd   : > { %v649_v17 = vmul.f32 %v2506_v23, %v2462_v5  ;;  %v722_v25 = vmul.f32 %v2510_v24, %v2467_v6  ;;  %v650_v31 = vmul.f32 %v2506_v23, %v2472_v7  ;;  %v723_v33 = vmul.f32 %v2510_v24, %v2477_v11 }
 0x1fe   : > { %v651_v36 = vmul.f32 %v2506_v23, %v2482_v14  ;;  %v724_v37 = vmul.f32 %v2510_v24, %v2487_v15  ;;  %v652_v38 = vmul.f32 %v2506_v23, %v2492_v18  ;;  %v725_v42 = vmul.f32 %v2510_v24, %v2497_v19 }
 0x1ff   : > { %677 = vst.msk [vmem:[#allocation2] sm:$0xff] %vm571_vm5, %v649_v17  ;;  %750 = vst.msk [vmem:[#allocation2 + $0x148] sm:$0xff] %vm571_vm5, %v722_v25  ;;  %v653_v44 = vmul.f32 %v2506_v23, %v2502_v22  ;;  %v726_v45 = vmul.f32 %v2510_v24, %v2515_v26  ;;  %v654_v46 = vmul.f32 %v2506_v23, %v2520_v27 }
 0x200   : > { %678 = vst.msk [vmem:[#allocation2 + $0x8] sm:$0xff] %vm571_vm5, %v650_v31  ;;  %751 = vst.msk [vmem:[#allocation2 + $0x150] sm:$0xff] %vm571_vm5, %v723_v33  ;;  %v727_v47 = vmul.f32 %v2510_v24, %v2525_v28  ;;  %v655_v39 = vmul.f32 %v2506_v23, %v2534_v20  ;;  %v728_v56 = vmul.f32 %v2510_v24, %v2539_v29 }
 0x201   : > { %679 = vst.msk [vmem:[#allocation2 + $0x10] sm:$0xff] %vm571_vm5, %v651_v36  ;;  %752 = vst.msk [vmem:[#allocation2 + $0x158] sm:$0xff] %vm571_vm5, %v724_v37  ;;  %v656_v50 = vmul.f32 %v2506_v23, %v2544_v30  ;;  %v729_v51 = vmul.f32 %v2510_v24, %v2557_v34  ;;  %v657_v4 = vmul.f32 %v2506_v23, %v2562_v32 }
 0x202   : > { %680 = vst.msk [vmem:[#allocation2 + $0x18] sm:$0xff] %vm571_vm5, %v652_v38  ;;  %753 = vst.msk [vmem:[#allocation2 + $0x160] sm:$0xff] %vm571_vm5, %v725_v42  ;;  %v730_v55 = vmul.f32 %v2510_v24, %v2567_v35  ;;  %v658_v16 = vmul.f32 %v2506_v23, %v2580_v41  ;;  %v731_v57 = vmul.f32 %v2510_v24, %v2585_v40 }
 0x203   : > { %681 = vst.msk [vmem:[#allocation2 + $0x20] sm:$0xff] %vm571_vm5, %v653_v44  ;;  %754 = vst.msk [vmem:[#allocation2 + $0x168] sm:$0xff] %vm571_vm5, %v726_v45  ;;  %v659_v58 = vmul.f32 %v2506_v23, %v2590_v43  ;;  %v732_v60 = vmul.f32 %v2510_v24, %v2607_v59  ;;  %v660_v0 = vmul.f32 %v2506_v23, %v2612_v48 }
 0x204   : > { %682 = vst.msk [vmem:[#allocation2 + $0x28] sm:$0xff] %vm571_vm5, %v654_v46  ;;  %755 = vst.msk [vmem:[#allocation2 + $0x170] sm:$0xff] %vm571_vm5, %v727_v47  ;;  %v733_v61 = vmul.f32 %v2510_v24, %v2617_v49  ;;  %v661_v10 = vmul.f32 %v2506_v23, %v2634_v52  ;;  %v734_v62 = vmul.f32 %v2510_v24, %v2639_v53 }
 0x205   : > { %683 = vst.msk [vmem:[#allocation2 + $0x30] sm:$0xff] %vm571_vm5, %v655_v39  ;;  %756 = vst.msk [vmem:[#allocation2 + $0x178] sm:$0xff] %vm571_vm5, %v728_v56  ;;  %v662_v63 = vmul.f32 %v2506_v23, %v2467_v6  ;;  %v735_v1 = vmul.f32 %v2510_v24, %v2644_v54  ;;  %v663_v2 = vmul.f32 %v2506_v23, %v2477_v11 }
 0x206   : > { %684 = vst.msk [vmem:[#allocation2 + $0x38] sm:$0xff] %vm571_vm5, %v656_v50  ;;  %757 = vst.msk [vmem:[#allocation2 + $0x180] sm:$0xff] %vm571_vm5, %v729_v51  ;;  %v736_v3 = vmul.f32 %v2510_v24, %v2661_v12  ;;  %v664_v8 = vmul.f32 %v2506_v23, %v2487_v15  ;;  %v769_v9 = vmul.f32 %v2529_v21, %v2462_v5  ;;  %v825_v36 = vld [vmem:[#allocation2] sm:$0xff]  ;;  %v866_v37 = vld [vmem:[#allocation2 + $0x148] sm:$0xff] }
 0x207   : > { %685 = vst.msk [vmem:[#allocation2 + $0x40] sm:$0xff] %vm571_vm5, %v657_v4  ;;  %758 = vst.msk [vmem:[#allocation2 + $0x188] sm:$0xff] %vm571_vm5, %v730_v55  ;;  %v665_v17 = vmul.f32 %v2506_v23, %v2497_v19  ;;  %v770_v25 = vmul.f32 %v2529_v21, %v2472_v7  ;;  %v666_v31 = vmul.f32 %v2506_v23, %v2515_v26  ;;  %1992 = vmatmul.mubr.msk.f32.vlgmr.msra.gmra.mrb[2].mxu0 %vm571_vm5, %v825_v36 }
 0x208   : > { %686 = vst.msk [vmem:[#allocation2 + $0x48] sm:$0xff] %vm571_vm5, %v658_v16  ;;  %759 = vst.msk [vmem:[#allocation2 + $0x190] sm:$0xff] %vm571_vm5, %v731_v57  ;;  %v771_v33 = vmul.f32 %v2529_v21, %v2482_v14  ;;  %v667_v38 = vmul.f32 %v2506_v23, %v2525_v28  ;;  %v772_v42 = vmul.f32 %v2529_v21, %v2492_v18  ;;  %2033 = vmatmul.mubr.msk.f32.vlgmr.msra.gmra.mrb[0].mxu1 %vm571_vm5, %v866_v37 }
 0x209   : > { %687 = vst.msk [vmem:[#allocation2 + $0x50] sm:$0xff] %vm571_vm5, %v659_v58  ;;  %760 = vst.msk [vmem:[#allocation2 + $0x198] sm:$0xff] %vm571_vm5, %v732_v60  ;;  %v668_v44 = vmul.f32 %v2506_v23, %v2539_v29  ;;  %v773_v45 = vmul.f32 %v2529_v21, %v2502_v22  ;;  %v669_v46 = vmul.f32 %v2506_v23, %v2557_v34  ;;  %1231 = vmatprep.mubr.f32.mxu0 %v2255_v13  ;;  %v826_v58 = vld [vmem:[#allocation2 + $0x8] sm:$0xff]  ;;  %v867_v60 = vld [vmem:[#allocation2 + $0x150] sm:$0xff] }
 0x20a   : > { %688 = vst.msk [vmem:[#allocation2 + $0x58] sm:$0xff] %vm571_vm5, %v660_v0  ;;  %761 = vst.msk [vmem:[#allocation2 + $0x1a0] sm:$0xff] %vm571_vm5, %v733_v61  ;;  %v774_v47 = vmul.f32 %v2529_v21, %v2520_v27  ;;  %v670_v39 = vmul.f32 %v2506_v23, %v2567_v35  ;;  %1477 = vmatprep.mubr.f32.mxu1 %v2255_v13  ;;  %v775_v56 = vmul.f32 %v2529_v21, %v2534_v20 }
 0x20b   : > { %689 = vst.msk [vmem:[#allocation2 + $0x60] sm:$0xff] %vm571_vm5, %v661_v10  ;;  %762 = vst.msk [vmem:[#allocation2 + $0x1a8] sm:$0xff] %vm571_vm5, %v734_v62  ;;  %v671_v50 = vmul.f32 %v2506_v23, %v2585_v40  ;;  %v776_v51 = vmul.f32 %v2529_v21, %v2544_v30  ;;  %v672_v4 = vmul.f32 %v2506_v23, %v2607_v59  ;;  %1993 = vmatmul.mubr.msk.f32.gmra.mrb[4].mxu0 %vm571_vm5, %v826_v58 }
 0x20c   : > { %690 = vst.msk [vmem:[#allocation2 + $0x68] sm:$0xff] %vm571_vm5, %v662_v63  ;;  %763 = vst.msk [vmem:[#allocation2 + $0x1b0] sm:$0xff] %vm571_vm5, %v735_v1  ;;  %v777_v55 = vmul.f32 %v2529_v21, %v2562_v32  ;;  %v673_v16 = vmul.f32 %v2506_v23, %v2617_v49  ;;  %v778_v57 = vmul.f32 %v2529_v21, %v2580_v41  ;;  %2034 = vmatmul.mubr.msk.f32.gmra.mrb[2].mxu1 %vm571_vm5, %v867_v60 }
 0x20d   : > { %691 = vst.msk [vmem:[#allocation2 + $0x70] sm:$0xff] %vm571_vm5, %v663_v2  ;;  %764 = vst.msk [vmem:[#allocation2 + $0x1b8] sm:$0xff] %vm571_vm5, %v736_v3  ;;  %v674_v0 = vmul.f32 %v2506_v23, %v2639_v53  ;;  %v779_v61 = vmul.f32 %v2529_v21, %v2590_v43  ;;  %v675_v10 = vmul.f32 %v2506_v23, %v2644_v54  ;;  %1237 = vmatprep.mubr.f32.mxu0 %v2255_v13  ;;  %v873_v36 = vld [vmem:[#allocation2 + $0x180] sm:$0xff] }
 0x20e   : > { %692 = vst.msk [vmem:[#allocation2 + $0x78] sm:$0xff] %vm571_vm5, %v664_v8  ;;  %797 = vst.msk [vmem:[#allocation2 + $0x1c0] sm:$0xff] %vm571_vm5, %v769_v9  ;;  %v780_v62 = vmul.f32 %v2529_v21, %v2612_v48  ;;  %v676_v63 = vmul.f32 %v2506_v23, %v2661_v12  ;;  %v781_v1 = vmul.f32 %v2529_v21, %v2634_v52  ;;  %1483 = vmatprep.mubr.f32.mxu1 %v2255_v13  ;;  %v833_v37 = vld [vmem:[#allocation2 + $0x40] sm:$0xff] }
 0x20f   : > { %693 = vst.msk [vmem:[#allocation2 + $0x80] sm:$0xff] %vm571_vm5, %v665_v17  ;;  %798 = vst.msk [vmem:[#allocation2 + $0x1c8] sm:$0xff] %vm571_vm5, %v770_v25  ;;  %v709_v2 = vmul.f32 %v2510_v24, %v2462_v5  ;;  %v782_v23 = vmul.f32 %v2529_v21, %v2467_v6  ;;  %v710_v3 = vmul.f32 %v2510_v24, %v2472_v7  ;;  %v827_v17 = vld [vmem:[#allocation2 + $0x10] sm:$0xff] }
 0x210   : > { %694 = vst.msk [vmem:[#allocation2 + $0x88] sm:$0xff] %vm571_vm5, %v666_v31  ;;  %799 = vst.msk [vmem:[#allocation2 + $0x1d0] sm:$0xff] %vm571_vm5, %v771_v33  ;;  %v783_v5 = vmul.f32 %v2529_v21, %v2477_v11  ;;  %v711_v8 = vmul.f32 %v2510_v24, %v2482_v14  ;;  %v784_v9 = vmul.f32 %v2529_v21, %v2487_v15  ;;  %v868_v11 = vld [vmem:[#allocation2 + $0x158] sm:$0xff]  ;;  %1994 = vmatmul.mubr.msk.f32.gmra.mrb[6].mxu0 %vm571_vm5, %v827_v17 }
 0x211   : > { %695 = vst.msk [vmem:[#allocation2 + $0x90] sm:$0xff] %vm571_vm5, %v667_v38  ;;  %800 = vst.msk [vmem:[#allocation2 + $0x1d8] sm:$0xff] %vm571_vm5, %v772_v42  ;;  %v712_v6 = vmul.f32 %v2510_v24, %v2492_v18  ;;  %v785_v7 = vmul.f32 %v2529_v21, %v2497_v19  ;;  %v713_v14 = vmul.f32 %v2510_v24, %v2502_v22  ;;  %2035 = vmatmul.mubr.msk.f32.gmra.mrb[4].mxu1 %vm571_vm5, %v868_v11  ;;  %v828_v31 = vld [vmem:[#allocation2 + $0x18] sm:$0xff]  ;;  %v874_v38 = vld [vmem:[#allocation2 + $0x188] sm:$0xff] }
 0x212   : > { %696 = vst.msk [vmem:[#allocation2 + $0x98] sm:$0xff] %vm571_vm5, %v668_v44  ;;  %801 = vst.msk [vmem:[#allocation2 + $0x1e0] sm:$0xff] %vm571_vm5, %v773_v45  ;;  %v786_v15 = vmul.f32 %v2529_v21, %v2515_v26  ;;  %v714_v18 = vmul.f32 %v2510_v24, %v2520_v27  ;;  %v787_v19 = vmul.f32 %v2529_v21, %v2525_v28  ;;  %1243 = vmatprep.mubr.f32.mxu0 %v2255_v13  ;;  %v832_v33 = vld [vmem:[#allocation2 + $0x38] sm:$0xff]  ;;  %v834_v42 = vld [vmem:[#allocation2 + $0x48] sm:$0xff] }
 0x213   : > { %697 = vst.msk [vmem:[#allocation2 + $0xa0] sm:$0xff] %vm571_vm5, %v669_v46  ;;  %802 = vst.msk [vmem:[#allocation2 + $0x1e8] sm:$0xff] %vm571_vm5, %v774_v47  ;;  %v715_v22 = vmul.f32 %v2510_v24, %v2534_v20  ;;  %v788_v26 = vmul.f32 %v2529_v21, %v2539_v29  ;;  %v716_v27 = vmul.f32 %v2510_v24, %v2544_v30  ;;  %1489 = vmatprep.mubr.f32.mxu1 %v2255_v13  ;;  %v875_v44 = vld [vmem:[#allocation2 + $0x190] sm:$0xff]  ;;  %v876_v46 = vld [vmem:[#allocation2 + $0x198] sm:$0xff] }
 0x214   : > { %698 = vst.msk [vmem:[#allocation2 + $0xa8] sm:$0xff] %vm571_vm5, %v670_v39  ;;  %803 = vst.msk [vmem:[#allocation2 + $0x1f0] sm:$0xff] %vm571_vm5, %v775_v56  ;;  %v789_v28 = vmul.f32 %v2529_v21, %v2557_v34  ;;  %v717_v20 = vmul.f32 %v2510_v24, %v2562_v32  ;;  %v790_v29 = vmul.f32 %v2529_v21, %v2567_v35  ;;  %v869_v35 = vld [vmem:[#allocation2 + $0x160] sm:$0xff]  ;;  %1995 = vmatmul.mubr.msk.f32.gmra.mrb[8].mxu0 %vm571_vm5, %v828_v31  ;;  %v835_v45 = vld [vmem:[#allocation2 + $0x50] sm:$0xff] }
 0x215   : > { %699 = vst.msk [vmem:[#allocation2 + $0xb0] sm:$0xff] %vm571_vm5, %v671_v50  ;;  %804 = vst.msk [vmem:[#allocation2 + $0x1f8] sm:$0xff] %vm571_vm5, %v776_v51  ;;  %v718_v30 = vmul.f32 %v2510_v24, %v2580_v41  ;;  %v791_v25 = vmul.f32 %v2529_v21, %v2585_v40  ;;  %v719_v34 = vmul.f32 %v2510_v24, %v2590_v43  ;;  %2036 = vmatmul.mubr.msk.f32.gmra.mrb[6].mxu1 %vm571_vm5, %v869_v35  ;;  %v836_v47 = vld [vmem:[#allocation2 + $0x58] sm:$0xff]  ;;  %v877_v39 = vld [vmem:[#allocation2 + $0x1a0] sm:$0xff] }
 0x216   : > { %700 = vst.msk [vmem:[#allocation2 + $0xb8] sm:$0xff] %vm571_vm5, %v672_v4  ;;  %805 = vst.msk [vmem:[#allocation2 + $0x200] sm:$0xff] %vm571_vm5, %v777_v55  ;;  %v792_v32 = vmul.f32 %v2529_v21, %v2607_v59  ;;  %v720_v41 = vmul.f32 %v2510_v24, %v2612_v48  ;;  %v793_v40 = vmul.f32 %v2529_v21, %v2617_v49  ;;  %1249 = vmatprep.mubr.f32.mxu0 %v2255_v13  ;;  %v829_v49 = vld [vmem:[#allocation2 + $0x20] sm:$0xff]  ;;  %v878_v50 = vld [vmem:[#allocation2 + $0x1a8] sm:$0xff] }
 0x217   : > { %701 = vst.msk [vmem:[#allocation2 + $0xc0] sm:$0xff] %vm571_vm5, %v673_v16  ;;  %806 = vst.msk [vmem:[#allocation2 + $0x208] sm:$0xff] %vm571_vm5, %v778_v57  ;;  %v721_v43 = vmul.f32 %v2510_v24, %v2634_v52  ;;  %v794_v59 = vmul.f32 %v2529_v21, %v2639_v53  ;;  %v795_v48 = vmul.f32 %v2529_v21, %v2644_v54  ;;  %1495 = vmatprep.mubr.f32.mxu1 %v2255_v13  ;;  %v870_v52 = vld [vmem:[#allocation2 + $0x168] sm:$0xff]  ;;  %v871_v53 = vld [vmem:[#allocation2 + $0x170] sm:$0xff] }
 0x218   : > { %702 = vst.msk [vmem:[#allocation2 + $0xc8] sm:$0xff] %vm571_vm5, %v674_v0  ;;  %807 = vst.msk [vmem:[#allocation2 + $0x210] sm:$0xff] %vm571_vm5, %v779_v61  ;;  %v796_v24 = vmul.f32 %v2529_v21, %v2661_v12  ;;  %1996 = vmatmul.mubr.msk.f32.gmra.mrb[10].mxu0 %vm571_vm5, %v829_v49  ;;  %v830_v21 = vld [vmem:[#allocation2 + $0x28] sm:$0xff]  ;;  %v831_v54 = vld [vmem:[#allocation2 + $0x30] sm:$0xff] }
 0x219   : > { %703 = vst.msk [vmem:[#allocation2 + $0xd0] sm:$0xff] %vm571_vm5, %v675_v10  ;;  %808 = vst.msk [vmem:[#allocation2 + $0x218] sm:$0xff] %vm571_vm5, %v780_v62  ;;  %2037 = vmatmul.mubr.msk.f32.gmra.mrb[8].mxu1 %vm571_vm5, %v870_v52  ;;  %1255 = vmatprep.mubr.f32.mxu0 %v2255_v13  ;;  %v872_v12 = vld [vmem:[#allocation2 + $0x178] sm:$0xff]  ;;  %v837_v56 = vld [vmem:[#allocation2 + $0x60] sm:$0xff] }
 0x21a   : > { %704 = vst.msk [vmem:[#allocation2 + $0xd8] sm:$0xff] %vm571_vm5, %v676_v63  ;;  %809 = vst.msk [vmem:[#allocation2 + $0x220] sm:$0xff] %vm571_vm5, %v781_v1  ;;  %1501 = vmatprep.mubr.f32.mxu1 %v2255_v13  ;;  %v838_v51 = vld [vmem:[#allocation2 + $0x68] sm:$0xff]  ;;  %v879_v4 = vld [vmem:[#allocation2 + $0x1b0] sm:$0xff] }
 0x21b   : > { %737 = vst.msk [vmem:[#allocation2 + $0xe0] sm:$0xff] %vm571_vm5, %v709_v2  ;;  %810 = vst.msk [vmem:[#allocation2 + $0x228] sm:$0xff] %vm571_vm5, %v782_v23  ;;  %v839_v55 = vld [vmem:[#allocation2 + $0x70] sm:$0xff]  ;;  %v880_v16 = vld [vmem:[#allocation2 + $0x1b8] sm:$0xff] }
 0x21c   : > { %738 = vst.msk [vmem:[#allocation2 + $0xe8] sm:$0xff] %vm571_vm5, %v710_v3  ;;  %811 = vst.msk [vmem:[#allocation2 + $0x230] sm:$0xff] %vm571_vm5, %v783_v5  ;;  %1997 = vmatmul.mubr.msk.f32.gmra.mrb[12].mxu0 %vm571_vm5, %v830_v21  ;;  %v840_v57 = vld [vmem:[#allocation2 + $0x78] sm:$0xff]  ;;  %v881_v58 = vld [vmem:[#allocation2 + $0x1c0] sm:$0xff] }
 0x21d   : > { %739 = vst.msk [vmem:[#allocation2 + $0xf0] sm:$0xff] %vm571_vm5, %v711_v8  ;;  %812 = vst.msk [vmem:[#allocation2 + $0x238] sm:$0xff] %vm571_vm5, %v784_v9  ;;  %2038 = vmatmul.mubr.msk.f32.gmra.mrb[10].mxu1 %vm571_vm5, %v871_v53  ;;  %1261 = vmatprep.mubr.f32.mxu0 %v2255_v13  ;;  %v841_v60 = vld [vmem:[#allocation2 + $0x80] sm:$0xff]  ;;  %v882_v0 = vld [vmem:[#allocation2 + $0x1c8] sm:$0xff] }
 0x21e   : > { %740 = vst.msk [vmem:[#allocation2 + $0xf8] sm:$0xff] %vm571_vm5, %v712_v6  ;;  %813 = vst.msk [vmem:[#allocation2 + $0x240] sm:$0xff] %vm571_vm5, %v785_v7  ;;  %1507 = vmatprep.mubr.f32.mxu1 %v2255_v13  ;;  %v842_v61 = vld [vmem:[#allocation2 + $0x88] sm:$0xff]  ;;  %v883_v10 = vld [vmem:[#allocation2 + $0x1d0] sm:$0xff] }
 0x21f   : > { %741 = vst.msk [vmem:[#allocation2 + $0x100] sm:$0xff] %vm571_vm5, %v713_v14  ;;  %814 = vst.msk [vmem:[#allocation2 + $0x248] sm:$0xff] %vm571_vm5, %v786_v15  ;;  %v843_v62 = vld [vmem:[#allocation2 + $0x90] sm:$0xff]  ;;  %v884_v63 = vld [vmem:[#allocation2 + $0x1d8] sm:$0xff] }
 0x220   : > { %742 = vst.msk [vmem:[#allocation2 + $0x108] sm:$0xff] %vm571_vm5, %v714_v18  ;;  %815 = vst.msk [vmem:[#allocation2 + $0x250] sm:$0xff] %vm571_vm5, %v787_v19  ;;  %1998 = vmatmul.mubr.msk.f32.gmra.mrb[14].mxu0 %vm571_vm5, %v831_v54  ;;  %v844_v1 = vld [vmem:[#allocation2 + $0x98] sm:$0xff]  ;;  %v885_v2 = vld [vmem:[#allocation2 + $0x1e0] sm:$0xff] }
 0x221   : > { %743 = vst.msk [vmem:[#allocation2 + $0x110] sm:$0xff] %vm571_vm5, %v715_v22  ;;  %816 = vst.msk [vmem:[#allocation2 + $0x258] sm:$0xff] %vm571_vm5, %v788_v26  ;;  %2039 = vmatmul.mubr.msk.f32.gmra.mrb[12].mxu1 %vm571_vm5, %v872_v12  ;;  %1267 = vmatprep.mubr.f32.mxu0 %v2255_v13  ;;  %v845_v23 = vld [vmem:[#allocation2 + $0xa0] sm:$0xff]  ;;  %v886_v3 = vld [vmem:[#allocation2 + $0x1e8] sm:$0xff] }
 0x222   : > { %744 = vst.msk [vmem:[#allocation2 + $0x118] sm:$0xff] %vm571_vm5, %v716_v27  ;;  %817 = vst.msk [vmem:[#allocation2 + $0x260] sm:$0xff] %vm571_vm5, %v789_v28  ;;  %1513 = vmatprep.mubr.f32.mxu1 %v2255_v13  ;;  %v846_v5 = vld [vmem:[#allocation2 + $0xa8] sm:$0xff]  ;;  %v887_v8 = vld [vmem:[#allocation2 + $0x1f0] sm:$0xff] }
 0x223   : > { %745 = vst.msk [vmem:[#allocation2 + $0x120] sm:$0xff] %vm571_vm5, %v717_v20  ;;  %818 = vst.msk [vmem:[#allocation2 + $0x268] sm:$0xff] %vm571_vm5, %v790_v29  ;;  %v847_v9 = vld [vmem:[#allocation2 + $0xb0] sm:$0xff]  ;;  %v888_v6 = vld [vmem:[#allocation2 + $0x1f8] sm:$0xff] }
 0x224   : > { %746 = vst.msk [vmem:[#allocation2 + $0x128] sm:$0xff] %vm571_vm5, %v718_v30  ;;  %819 = vst.msk [vmem:[#allocation2 + $0x270] sm:$0xff] %vm571_vm5, %v791_v25  ;;  %1999 = vmatmul.mubr.msk.f32.gmra.mrb[16].mxu0 %vm571_vm5, %v832_v33  ;;  %v848_v7 = vld [vmem:[#allocation2 + $0xb8] sm:$0xff]  ;;  %v889_v17 = vld [vmem:[#allocation2 + $0x200] sm:$0xff] }
 0x225   : > { %747 = vst.msk [vmem:[#allocation2 + $0x130] sm:$0xff] %vm571_vm5, %v719_v34  ;;  %820 = vst.msk [vmem:[#allocation2 + $0x278] sm:$0xff] %vm571_vm5, %v792_v32  ;;  %2040 = vmatmul.mubr.msk.f32.gmra.mrb[14].mxu1 %vm571_vm5, %v873_v36  ;;  %1273 = vmatprep.mubr.f32.mxu0 %v2255_v13  ;;  %v849_v11 = vld [vmem:[#allocation2 + $0xc0] sm:$0xff]  ;;  %v890_v14 = vld [vmem:[#allocation2 + $0x208] sm:$0xff] }
 0x226   : > { %748 = vst.msk [vmem:[#allocation2 + $0x138] sm:$0xff] %vm571_vm5, %v720_v41  ;;  %821 = vst.msk [vmem:[#allocation2 + $0x280] sm:$0xff] %vm571_vm5, %v793_v40  ;;  %1519 = vmatprep.mubr.f32.mxu1 %v2255_v13  ;;  %v850_v15 = vld [vmem:[#allocation2 + $0xc8] sm:$0xff]  ;;  %v891_v18 = vld [vmem:[#allocation2 + $0x210] sm:$0xff] }
 0x227   : > { %749 = vst.msk [vmem:[#allocation2 + $0x140] sm:$0xff] %vm571_vm5, %v721_v43  ;;  %822 = vst.msk [vmem:[#allocation2 + $0x288] sm:$0xff] %vm571_vm5, %v794_v59  ;;  %v851_v19 = vld [vmem:[#allocation2 + $0xd0] sm:$0xff]  ;;  %v892_v22 = vld [vmem:[#allocation2 + $0x218] sm:$0xff] }
 0x228   : > { %823 = vst.msk [vmem:[#allocation2 + $0x290] sm:$0xff] %vm571_vm5, %v795_v48  ;;  %824 = vst.msk [vmem:[#allocation2 + $0x298] sm:$0xff] %vm571_vm5, %v796_v24  ;;  %2000 = vmatmul.mubr.msk.f32.gmra.mrb[18].mxu0 %vm571_vm5, %v833_v37  ;;  %v852_v26 = vld [vmem:[#allocation2 + $0xd8] sm:$0xff]  ;;  %v893_v27 = vld [vmem:[#allocation2 + $0x220] sm:$0xff] }
 0x229   : > { %2041 = vmatmul.mubr.msk.f32.gmra.mrb[16].mxu1 %vm571_vm5, %v874_v38  ;;  %1279 = vmatprep.mubr.f32.mxu0 %v2255_v13  ;;  %v853_v28 = vld [vmem:[#allocation2 + $0xe0] sm:$0xff]  ;;  %v894_v20 = vld [vmem:[#allocation2 + $0x228] sm:$0xff]  ;;  %v895_v30 = vld [vmem:[#allocation2 + $0x230] sm:$0xff] }
 0x22a   : > { %1525 = vmatprep.mubr.f32.mxu1 %v2255_v13  ;;  %v854_v29 = vld [vmem:[#allocation2 + $0xe8] sm:$0xff]  ;;  %v855_v25 = vld [vmem:[#allocation2 + $0xf0] sm:$0xff]  ;;  %v896_v34 = vld [vmem:[#allocation2 + $0x238] sm:$0xff] }
 0x22b   : > { %v856_v32 = vld [vmem:[#allocation2 + $0xf8] sm:$0xff]  ;;  %v897_v31 = vld [vmem:[#allocation2 + $0x240] sm:$0xff]  ;;  %v898_v41 = vld [vmem:[#allocation2 + $0x248] sm:$0xff] }
 0x22c   : > { %2001 = vmatmul.mubr.msk.f32.gmra.mrb[20].mxu0 %vm571_vm5, %v834_v42  ;;  %v857_v35 = vld [vmem:[#allocation2 + $0x100] sm:$0xff]  ;;  %v858_v40 = vld [vmem:[#allocation2 + $0x108] sm:$0xff]  ;;  %v899_v43 = vld [vmem:[#allocation2 + $0x250] sm:$0xff] }
 0x22d   : > { %2042 = vmatmul.mubr.msk.f32.gmra.mrb[18].mxu1 %vm571_vm5, %v875_v44  ;;  %1285 = vmatprep.mubr.f32.mxu0 %v2255_v13  ;;  %v859_v59 = vld [vmem:[#allocation2 + $0x110] sm:$0xff]  ;;  %v900_v48 = vld [vmem:[#allocation2 + $0x258] sm:$0xff]  ;;  %v901_v49 = vld [vmem:[#allocation2 + $0x260] sm:$0xff] }
 0x22e   : > { %1531 = vmatprep.mubr.f32.mxu1 %v2255_v13  ;;  %v860_v24 = vld [vmem:[#allocation2 + $0x118] sm:$0xff]  ;;  %v861_v52 = vld [vmem:[#allocation2 + $0x120] sm:$0xff]  ;;  %v902_v21 = vld [vmem:[#allocation2 + $0x268] sm:$0xff] }
 0x22f   : > { %v862_v53 = vld [vmem:[#allocation2 + $0x128] sm:$0xff]  ;;  %v903_v54 = vld [vmem:[#allocation2 + $0x270] sm:$0xff]  ;;  %v904_v33 = vld [vmem:[#allocation2 + $0x278] sm:$0xff] }
 0x230   : > { %2002 = vmatmul.mubr.msk.f32.gmra.mrb[22].mxu0 %vm571_vm5, %v835_v45  ;;  %v863_v12 = vld [vmem:[#allocation2 + $0x130] sm:$0xff]  ;;  %v864_v36 = vld [vmem:[#allocation2 + $0x138] sm:$0xff]  ;;  %v905_v37 = vld [vmem:[#allocation2 + $0x280] sm:$0xff] }
 0x231   : > { %2043 = vmatmul.mubr.msk.f32.gmra.mrb[20].mxu1 %vm571_vm5, %v876_v46  ;;  %1291 = vmatprep.mubr.f32.mxu0 %v2255_v13  ;;  %v865_v38 = vld [vmem:[#allocation2 + $0x140] sm:$0xff]  ;;  %v906_v42 = vld [vmem:[#allocation2 + $0x288] sm:$0xff]  ;;  %v907_v44 = vld [vmem:[#allocation2 + $0x290] sm:$0xff] }
 0x232   : > { %1537 = vmatprep.mubr.f32.mxu1 %v2255_v13  ;;  %v908_v45 = vld [vmem:[#allocation2 + $0x298] sm:$0xff] }
 0x234   : > { %2003 = vmatmul.mubr.msk.f32.gmra.mrb[24].mxu0 %vm571_vm5, %v836_v47 }
 0x235   : > { %2044 = vmatmul.mubr.msk.f32.gmra.mrb[22].mxu1 %vm571_vm5, %v877_v39  ;;  %1297 = vmatprep.mubr.f32.mxu0 %v2255_v13 }
 0x236   : > { %1543 = vmatprep.mubr.f32.mxu1 %v2255_v13 }
 0x238   : > { %2004 = vmatmul.mubr.msk.f32.gmra.mrb[26].mxu0 %vm571_vm5, %v837_v56 }
 0x239   : > { %2045 = vmatmul.mubr.msk.f32.gmra.mrb[24].mxu1 %vm571_vm5, %v878_v50  ;;  %1303 = vmatprep.mubr.f32.mxu0 %v2255_v13 }
 0x23a   : > { %1549 = vmatprep.mubr.f32.mxu1 %v2255_v13 }
 0x23c   : > { %2005 = vmatmul.mubr.msk.f32.gmra.mrb[28].mxu0 %vm571_vm5, %v838_v51 }
 0x23d   : > { %2046 = vmatmul.mubr.msk.f32.gmra.mrb[26].mxu1 %vm571_vm5, %v879_v4  ;;  %1309 = vmatprep.mubr.f32.mxu0 %v2255_v13 }
 0x23e   : > { %1555 = vmatprep.mubr.f32.mxu1 %v2255_v13 }
 0x240   : > { %2006 = vmatmul.mubr.msk.f32.gmra.mrb[30].mxu0 %vm571_vm5, %v839_v55 }
 0x241   : > { %2047 = vmatmul.mubr.msk.f32.gmra.mrb[28].mxu1 %vm571_vm5, %v880_v16  ;;  %1315 = vmatprep.mubr.f32.mxu0 %v2255_v13 }
 0x242   : > { %1561 = vmatprep.mubr.f32.mxu1 %v2255_v13 }
 0x244   : > { %2007 = vmatmul.mubr.msk.f32.gmra.mrb[32].mxu0 %vm571_vm5, %v840_v57 }
 0x245   : > { %2048 = vmatmul.mubr.msk.f32.gmra.mrb[30].mxu1 %vm571_vm5, %v881_v58  ;;  %1321 = vmatprep.mubr.f32.mxu0 %v2255_v13 }
 0x246   : > { %1567 = vmatprep.mubr.f32.mxu1 %v2255_v13 }
 0x248   : > { %2008 = vmatmul.mubr.msk.f32.gmra.mrb[34].mxu0 %vm571_vm5, %v841_v60 }
 0x249   : > { %2049 = vmatmul.mubr.msk.f32.gmra.mrb[32].mxu1 %vm571_vm5, %v882_v0  ;;  %1327 = vmatprep.mubr.f32.mxu0 %v2255_v13 }
 0x24a   : > { %1573 = vmatprep.mubr.f32.mxu1 %v2255_v13 }
 0x24c   : > { %2009 = vmatmul.mubr.msk.f32.gmra.mrb[36].mxu0 %vm571_vm5, %v842_v61 }
 0x24d   : > { %2050 = vmatmul.mubr.msk.f32.gmra.mrb[34].mxu1 %vm571_vm5, %v883_v10  ;;  %1333 = vmatprep.mubr.f32.mxu0 %v2255_v13 }
 0x24e   : > { %1579 = vmatprep.mubr.f32.mxu1 %v2255_v13 }
 0x250   : > { %2010 = vmatmul.mubr.msk.f32.gmra.mrb[38].mxu0 %vm571_vm5, %v843_v62 }
 0x251   : > { %2051 = vmatmul.mubr.msk.f32.gmra.mrb[36].mxu1 %vm571_vm5, %v884_v63  ;;  %1339 = vmatprep.mubr.f32.mxu0 %v2255_v13 }
 0x252   : > { %1585 = vmatprep.mubr.f32.mxu1 %v2255_v13 }
 0x254   : > { %2011 = vmatmul.mubr.msk.f32.gmra.mrb[40].mxu0 %vm571_vm5, %v844_v1 }
 0x255   : > { %2052 = vmatmul.mubr.msk.f32.gmra.mrb[38].mxu1 %vm571_vm5, %v885_v2  ;;  %1345 = vmatprep.mubr.f32.mxu0 %v2255_v13 }
 0x256   : > { %1591 = vmatprep.mubr.f32.mxu1 %v2255_v13 }
 0x258   : > { %2012 = vmatmul.mubr.msk.f32.gmra.mrb[42].mxu0 %vm571_vm5, %v845_v23 }
 0x259   : > { %2053 = vmatmul.mubr.msk.f32.gmra.mrb[40].mxu1 %vm571_vm5, %v886_v3  ;;  %1351 = vmatprep.mubr.f32.mxu0 %v2255_v13 }
 0x25a   : > { %1597 = vmatprep.mubr.f32.mxu1 %v2255_v13 }
 0x25c   : > { %2013 = vmatmul.mubr.msk.f32.gmra.mrb[44].mxu0 %vm571_vm5, %v846_v5 }
 0x25d   : > { %2054 = vmatmul.mubr.msk.f32.gmra.mrb[42].mxu1 %vm571_vm5, %v887_v8  ;;  %1357 = vmatprep.mubr.f32.mxu0 %v2255_v13 }
 0x25e   : > { %1603 = vmatprep.mubr.f32.mxu1 %v2255_v13 }
 0x260   : > { %2014 = vmatmul.mubr.msk.f32.gmra.mrb[46].mxu0 %vm571_vm5, %v847_v9 }
 0x261   : > { %2055 = vmatmul.mubr.msk.f32.gmra.mrb[44].mxu1 %vm571_vm5, %v888_v6  ;;  %1363 = vmatprep.mubr.f32.mxu0 %v2255_v13 }
 0x262   : > { %1609 = vmatprep.mubr.f32.mxu1 %v2255_v13 }
 0x264   : > { %2015 = vmatmul.mubr.msk.f32.gmra.mrb[48].mxu0 %vm571_vm5, %v848_v7 }
 0x265   : > { %2056 = vmatmul.mubr.msk.f32.gmra.mrb[46].mxu1 %vm571_vm5, %v889_v17  ;;  %1369 = vmatprep.mubr.f32.mxu0 %v2255_v13 }
 0x266   : > { %1615 = vmatprep.mubr.f32.mxu1 %v2255_v13 }
 0x268   : > { %2016 = vmatmul.mubr.msk.f32.gmra.mrb[50].mxu0 %vm571_vm5, %v849_v11 }
 0x269   : > { %2057 = vmatmul.mubr.msk.f32.gmra.mrb[48].mxu1 %vm571_vm5, %v890_v14  ;;  %1375 = vmatprep.mubr.f32.mxu0 %v2255_v13 }
 0x26a   : > { %1621 = vmatprep.mubr.f32.mxu1 %v2255_v13 }
 0x26c   : > { %2017 = vmatmul.mubr.msk.f32.gmra.mrb[52].mxu0 %vm571_vm5, %v850_v15 }
 0x26d   : > { %2058 = vmatmul.mubr.msk.f32.gmra.mrb[50].mxu1 %vm571_vm5, %v891_v18  ;;  %1381 = vmatprep.mubr.f32.mxu0 %v2255_v13 }
 0x26e   : > { %1627 = vmatprep.mubr.f32.mxu1 %v2255_v13 }
 0x270   : > { %2018 = vmatmul.mubr.msk.f32.gmra.mrb[54].mxu0 %vm571_vm5, %v851_v19 }
 0x271   : > { %2059 = vmatmul.mubr.msk.f32.gmra.mrb[52].mxu1 %vm571_vm5, %v892_v22  ;;  %1387 = vmatprep.mubr.f32.mxu0 %v2255_v13 }
 0x272   : > { %1633 = vmatprep.mubr.f32.mxu1 %v2255_v13 }
 0x274   : > { %2019 = vmatmul.mubr.msk.f32.gmra.mrb[56].mxu0 %vm571_vm5, %v852_v26 }
 0x275   : > { %2060 = vmatmul.mubr.msk.f32.gmra.mrb[54].mxu1 %vm571_vm5, %v893_v27  ;;  %1393 = vmatprep.mubr.f32.mxu0 %v2255_v13 }
 0x276   : > { %1639 = vmatprep.mubr.f32.mxu1 %v2255_v13 }
 0x278   : > { %2020 = vmatmul.mubr.msk.f32.gmra.mrb[58].mxu0 %vm571_vm5, %v853_v28 }
 0x279   : > { %2061 = vmatmul.mubr.msk.f32.gmra.mrb[56].mxu1 %vm571_vm5, %v894_v20  ;;  %1399 = vmatprep.mubr.f32.mxu0 %v2255_v13 }
 0x27a   : > { %1645 = vmatprep.mubr.f32.mxu1 %v2255_v13 }
 0x27c   : > { %2021 = vmatmul.mubr.msk.f32.gmra.mrb[60].mxu0 %vm571_vm5, %v854_v29 }
 0x27d   : > { %2062 = vmatmul.mubr.msk.f32.gmra.mrb[58].mxu1 %vm571_vm5, %v895_v30  ;;  %1405 = vmatprep.mubr.f32.mxu0 %v2255_v13 }
 0x27e   : > { %1651 = vmatprep.mubr.f32.mxu1 %v2255_v13 }
 0x280   : > { %2022 = vmatmul.mubr.msk.f32.gmra.mrb[62].mxu0 %vm571_vm5, %v855_v25 }
 0x281   : > { %2063 = vmatmul.mubr.msk.f32.gmra.mrb[60].mxu1 %vm571_vm5, %v896_v34  ;;  %1411 = vmatprep.mubr.f32.mxu0 %v2255_v13 }
 0x282   : > { %1657 = vmatprep.mubr.f32.mxu1 %v2255_v13 }
 0x284   : > { %2023 = vmatmul.mubr.msk.f32.gmra.mrb[64].mxu0 %vm571_vm5, %v856_v32 }
 0x285   : > { %2064 = vmatmul.mubr.msk.f32.gmra.mrb[62].mxu1 %vm571_vm5, %v897_v31  ;;  %1417 = vmatprep.mubr.f32.mxu0 %v2255_v13 }
 0x286   : > { %1663 = vmatprep.mubr.f32.mxu1 %v2255_v13 }
 0x288   : > { %2024 = vmatmul.mubr.msk.f32.gmra.mrb[66].mxu0 %vm571_vm5, %v857_v35 }
 0x289   : > { %2065 = vmatmul.mubr.msk.f32.gmra.mrb[64].mxu1 %vm571_vm5, %v898_v41  ;;  %1423 = vmatprep.mubr.f32.mxu0 %v2255_v13 }
 0x28a   : > { %1669 = vmatprep.mubr.f32.mxu1 %v2255_v13 }
 0x28c   : > { %2025 = vmatmul.mubr.msk.f32.gmra.mrb[68].mxu0 %vm571_vm5, %v858_v40 }
 0x28d   : > { %2066 = vmatmul.mubr.msk.f32.gmra.mrb[66].mxu1 %vm571_vm5, %v899_v43  ;;  %1429 = vmatprep.mubr.f32.mxu0 %v2255_v13 }
 0x28e   : > { %1675 = vmatprep.mubr.f32.mxu1 %v2255_v13 }
 0x290   : > { %2026 = vmatmul.mubr.msk.f32.gmra.mrb[70].mxu0 %vm571_vm5, %v859_v59 }
 0x291   : > { %2067 = vmatmul.mubr.msk.f32.gmra.mrb[68].mxu1 %vm571_vm5, %v900_v48  ;;  %1435 = vmatprep.mubr.f32.mxu0 %v2255_v13 }
 0x292   : > { %1681 = vmatprep.mubr.f32.mxu1 %v2255_v13 }
 0x294   : > { %2027 = vmatmul.mubr.msk.f32.gmra.mrb[72].mxu0 %vm571_vm5, %v860_v24 }
 0x295   : > { %2068 = vmatmul.mubr.msk.f32.gmra.mrb[70].mxu1 %vm571_vm5, %v901_v49  ;;  %1441 = vmatprep.mubr.f32.mxu0 %v2255_v13 }
 0x296   : > { %1687 = vmatprep.mubr.f32.mxu1 %v2255_v13 }
 0x298   : > { %2028 = vmatmul.mubr.msk.f32.gmra.mrb[74].mxu0 %vm571_vm5, %v861_v52 }
 0x299   : > { %2069 = vmatmul.mubr.msk.f32.gmra.mrb[72].mxu1 %vm571_vm5, %v902_v21  ;;  %1447 = vmatprep.mubr.f32.mxu0 %v2255_v13 }
 0x29a   : > { %1693 = vmatprep.mubr.f32.mxu1 %v2255_v13 }
 0x29c   : > { %2029 = vmatmul.mubr.msk.f32.gmra.mrb[76].mxu0 %vm571_vm5, %v862_v53 }
 0x29d   : > { %2070 = vmatmul.mubr.msk.f32.gmra.mrb[74].mxu1 %vm571_vm5, %v903_v54  ;;  %1453 = vmatprep.mubr.f32.mxu0 %v2255_v13 }
 0x29e   : > { %1699 = vmatprep.mubr.f32.mxu1 %v2255_v13 }
 0x2a0   : > { %2030 = vmatmul.mubr.msk.f32.gmra.mrb[78].mxu0 %vm571_vm5, %v863_v12 }
 0x2a1   : > { %2071 = vmatmul.mubr.msk.f32.gmra.mrb[76].mxu1 %vm571_vm5, %v904_v33  ;;  %1459 = vmatprep.mubr.f32.mxu0 %v2255_v13 }
 0x2a2   : > { %1705 = vmatprep.mubr.f32.mxu1 %v2255_v13 }
 0x2a4   : > { %2031 = vmatmul.mubr.msk.f32.gmra.mrb[80].mxu0 %vm571_vm5, %v864_v36 }
 0x2a5   : > { %2072 = vmatmul.mubr.msk.f32.gmra.mrb[78].mxu1 %vm571_vm5, %v905_v37  ;;  %1465 = vmatprep.mubr.f32.mxu0 %v2255_v13 }
 0x2a6   : > { %1711 = vmatprep.mubr.f32.mxu1 %v2255_v13 }
 0x2a8   : > { %2032 = vmatmul.mubr.msk.f32.gmra.mrb[82].mxu0 %vm571_vm5, %v865_v38 }
 0x2a9   : > { %2073 = vmatmul.mubr.msk.f32.gmra.mrb[80].mxu1 %vm571_vm5, %v906_v42 }
 0x2aa   : > { %1717 = vmatprep.mubr.f32.mxu1 %v2255_v13 }
 0x2ad   : > { %2074 = vmatmul.mubr.msk.f32.gmra.mrb[82].mxu1 %vm571_vm5, %v907_v44 }
 0x2ae   : > { %1723 = vmatprep.mubr.f32.mxu1 %v2255_v13 }
 0x2b1   : > { %2075 = vmatmul.mubr.msk.f32.gmra.mrb[84].mxu1 %vm571_vm5, %v908_v45 }
 0x2da   : > { %v1227_v13 = vpop.f32.mrb[2].mxu0 }
 0x2db   : > { %v1473_v46 = vpop.f32.mrb[0].mxu1  ;;  %1730 = vst [vmem:[%s3033_s12] sm:$0xff] %v1227_v13  ;;  %v1229_v47 = vpop.f32.mrb[3].mxu0 }
 0x2dc   : > { %1813 = vst [vmem:[%s3033_s12 + $0x290] sm:$0xff] %v1473_v46  ;;  %v1475_v39 = vpop.f32.mrb[1].mxu1  ;;  %1732 = vst.msk [vmem:[%s3033_s12 + $0x8] sm:$0xff] %vm1731_vm6, %v1229_v47 }
 0x2dd   : > { %1814 = vst.msk [vmem:[%s3033_s12 + $0x298] sm:$0xff] %vm1731_vm6, %v1475_v39 }
 0x2de   : > { %v1233_v56 = vpop.f32.mrb[4].mxu0 }
 0x2df   : > { %v1479_v50 = vpop.f32.mrb[2].mxu1  ;;  %1733 = vst [vmem:[%s3033_s12 + $0x10] sm:$0xff] %v1233_v56  ;;  %v1235_v51 = vpop.f32.mrb[5].mxu0 }
 0x2e0   : > { %1815 = vst [vmem:[%s3033_s12 + $0x2a0] sm:$0xff] %v1479_v50  ;;  %v1481_v4 = vpop.f32.mrb[3].mxu1  ;;  %1734 = vst.msk [vmem:[%s3033_s12 + $0x18] sm:$0xff] %vm1731_vm6, %v1235_v51 }
 0x2e1   : > { %1816 = vst.msk [vmem:[%s3033_s12 + $0x2a8] sm:$0xff] %vm1731_vm6, %v1481_v4 }
 0x2e3   : > { %v1239_v55 = vpop.f32.mrb[6].mxu0 }
 0x2e4   : > { %v1485_v16 = vpop.f32.mrb[4].mxu1  ;;  %1735 = vst [vmem:[%s3033_s12 + $0x20] sm:$0xff] %v1239_v55  ;;  %v1241_v57 = vpop.f32.mrb[7].mxu0 }
 0x2e5   : > { %1817 = vst [vmem:[%s3033_s12 + $0x2b0] sm:$0xff] %v1485_v16  ;;  %v1487_v58 = vpop.f32.mrb[5].mxu1  ;;  %1736 = vst.msk [vmem:[%s3033_s12 + $0x28] sm:$0xff] %vm1731_vm6, %v1241_v57 }
 0x2e6   : > { %1818 = vst.msk [vmem:[%s3033_s12 + $0x2b8] sm:$0xff] %vm1731_vm6, %v1487_v58 }
 0x2e7   : > { %v1245_v60 = vpop.f32.mrb[8].mxu0 }
 0x2e8   : > { %v1491_v0 = vpop.f32.mrb[6].mxu1  ;;  %1737 = vst [vmem:[%s3033_s12 + $0x30] sm:$0xff] %v1245_v60  ;;  %v1247_v61 = vpop.f32.mrb[9].mxu0 }
 0x2e9   : > { %1819 = vst [vmem:[%s3033_s12 + $0x2c0] sm:$0xff] %v1491_v0  ;;  %v1493_v10 = vpop.f32.mrb[7].mxu1  ;;  %1738 = vst.msk [vmem:[%s3033_s12 + $0x38] sm:$0xff] %vm1731_vm6, %v1247_v61 }
 0x2ea   : > { %1820 = vst.msk [vmem:[%s3033_s12 + $0x2c8] sm:$0xff] %vm1731_vm6, %v1493_v10 }
 0x2eb   : > { %v1251_v62 = vpop.f32.mrb[10].mxu0 }
 0x2ec   : > { %v1497_v63 = vpop.f32.mrb[8].mxu1  ;;  %1739 = vst [vmem:[%s3033_s12 + $0x40] sm:$0xff] %v1251_v62  ;;  %v1253_v1 = vpop.f32.mrb[11].mxu0 }
 0x2ed   : > { %1821 = vst [vmem:[%s3033_s12 + $0x2d0] sm:$0xff] %v1497_v63  ;;  %v1499_v2 = vpop.f32.mrb[9].mxu1  ;;  %1740 = vst.msk [vmem:[%s3033_s12 + $0x48] sm:$0xff] %vm1731_vm6, %v1253_v1 }
 0x2ee   : > { %1822 = vst.msk [vmem:[%s3033_s12 + $0x2d8] sm:$0xff] %vm1731_vm6, %v1499_v2 }
 0x2ef   : > { %v1257_v23 = vpop.f32.mrb[12].mxu0 }
 0x2f0   : > { %v1503_v3 = vpop.f32.mrb[10].mxu1  ;;  %1741 = vst [vmem:[%s3033_s12 + $0x50] sm:$0xff] %v1257_v23  ;;  %v1259_v5 = vpop.f32.mrb[13].mxu0 }
 0x2f1   : > { %1823 = vst [vmem:[%s3033_s12 + $0x2e0] sm:$0xff] %v1503_v3  ;;  %v1505_v8 = vpop.f32.mrb[11].mxu1  ;;  %1742 = vst.msk [vmem:[%s3033_s12 + $0x58] sm:$0xff] %vm1731_vm6, %v1259_v5 }
 0x2f2   : > { %1824 = vst.msk [vmem:[%s3033_s12 + $0x2e8] sm:$0xff] %vm1731_vm6, %v1505_v8 }
 0x2f3   : > { %v1263_v9 = vpop.f32.mrb[14].mxu0 }
 0x2f4   : > { %v1509_v6 = vpop.f32.mrb[12].mxu1  ;;  %1743 = vst [vmem:[%s3033_s12 + $0x60] sm:$0xff] %v1263_v9  ;;  %v1265_v7 = vpop.f32.mrb[15].mxu0 }
 0x2f5   : > { %1825 = vst [vmem:[%s3033_s12 + $0x2f0] sm:$0xff] %v1509_v6  ;;  %v1511_v17 = vpop.f32.mrb[13].mxu1  ;;  %1744 = vst.msk [vmem:[%s3033_s12 + $0x68] sm:$0xff] %vm1731_vm6, %v1265_v7 }
 0x2f6   : > { %1826 = vst.msk [vmem:[%s3033_s12 + $0x2f8] sm:$0xff] %vm1731_vm6, %v1511_v17 }
 0x2f7   : > { %v1269_v11 = vpop.f32.mrb[16].mxu0 }
 0x2f8   : > { %v1515_v14 = vpop.f32.mrb[14].mxu1  ;;  %1745 = vst [vmem:[%s3033_s12 + $0x70] sm:$0xff] %v1269_v11  ;;  %v1271_v15 = vpop.f32.mrb[17].mxu0 }
 0x2f9   : > { %1827 = vst [vmem:[%s3033_s12 + $0x300] sm:$0xff] %v1515_v14  ;;  %v1517_v18 = vpop.f32.mrb[15].mxu1  ;;  %1746 = vst.msk [vmem:[%s3033_s12 + $0x78] sm:$0xff] %vm1731_vm6, %v1271_v15 }
 0x2fa   : > { %1828 = vst.msk [vmem:[%s3033_s12 + $0x308] sm:$0xff] %vm1731_vm6, %v1517_v18 }
 0x2fb   : > { %v1275_v19 = vpop.f32.mrb[18].mxu0 }
 0x2fc   : > { %v1521_v22 = vpop.f32.mrb[16].mxu1  ;;  %1747 = vst [vmem:[%s3033_s12 + $0x80] sm:$0xff] %v1275_v19  ;;  %v1277_v26 = vpop.f32.mrb[19].mxu0 }
 0x2fd   : > { %1829 = vst [vmem:[%s3033_s12 + $0x310] sm:$0xff] %v1521_v22  ;;  %v1523_v27 = vpop.f32.mrb[17].mxu1  ;;  %1748 = vst.msk [vmem:[%s3033_s12 + $0x88] sm:$0xff] %vm1731_vm6, %v1277_v26 }
 0x2fe   : > { %1830 = vst.msk [vmem:[%s3033_s12 + $0x318] sm:$0xff] %vm1731_vm6, %v1523_v27 }
 0x2ff   : > { %v1281_v28 = vpop.f32.mrb[20].mxu0 }
 0x300   : > { %v1527_v20 = vpop.f32.mrb[18].mxu1  ;;  %1749 = vst [vmem:[%s3033_s12 + $0x90] sm:$0xff] %v1281_v28  ;;  %v1283_v29 = vpop.f32.mrb[21].mxu0 }
 0x301   : > { %1831 = vst [vmem:[%s3033_s12 + $0x320] sm:$0xff] %v1527_v20  ;;  %v1529_v30 = vpop.f32.mrb[19].mxu1  ;;  %1750 = vst.msk [vmem:[%s3033_s12 + $0x98] sm:$0xff] %vm1731_vm6, %v1283_v29 }
 0x302   : > { %1832 = vst.msk [vmem:[%s3033_s12 + $0x328] sm:$0xff] %vm1731_vm6, %v1529_v30 }
 0x303   : > { %v1287_v25 = vpop.f32.mrb[22].mxu0 }
 0x304   : > { %v1533_v34 = vpop.f32.mrb[20].mxu1  ;;  %1751 = vst [vmem:[%s3033_s12 + $0xa0] sm:$0xff] %v1287_v25  ;;  %v1289_v32 = vpop.f32.mrb[23].mxu0 }
 0x305   : > { %1833 = vst [vmem:[%s3033_s12 + $0x330] sm:$0xff] %v1533_v34  ;;  %v1535_v31 = vpop.f32.mrb[21].mxu1  ;;  %1752 = vst.msk [vmem:[%s3033_s12 + $0xa8] sm:$0xff] %vm1731_vm6, %v1289_v32 }
 0x306   : > { %1834 = vst.msk [vmem:[%s3033_s12 + $0x338] sm:$0xff] %vm1731_vm6, %v1535_v31 }
 0x307   : > { %v1293_v35 = vpop.f32.mrb[24].mxu0 }
 0x308   : > { %v1539_v41 = vpop.f32.mrb[22].mxu1  ;;  %1753 = vst [vmem:[%s3033_s12 + $0xb0] sm:$0xff] %v1293_v35  ;;  %v1295_v40 = vpop.f32.mrb[25].mxu0 }
 0x309   : > { %1835 = vst [vmem:[%s3033_s12 + $0x340] sm:$0xff] %v1539_v41  ;;  %v1541_v43 = vpop.f32.mrb[23].mxu1  ;;  %1754 = vst.msk [vmem:[%s3033_s12 + $0xb8] sm:$0xff] %vm1731_vm6, %v1295_v40 }
 0x30a   : > { %1836 = vst.msk [vmem:[%s3033_s12 + $0x348] sm:$0xff] %vm1731_vm6, %v1541_v43 }
 0x30b   : > { %v1299_v59 = vpop.f32.mrb[26].mxu0 }
 0x30c   : > { %v1545_v48 = vpop.f32.mrb[24].mxu1  ;;  %1755 = vst [vmem:[%s3033_s12 + $0xc0] sm:$0xff] %v1299_v59  ;;  %v1301_v24 = vpop.f32.mrb[27].mxu0 }
 0x30d   : > { %1837 = vst [vmem:[%s3033_s12 + $0x350] sm:$0xff] %v1545_v48  ;;  %v1547_v49 = vpop.f32.mrb[25].mxu1  ;;  %1756 = vst.msk [vmem:[%s3033_s12 + $0xc8] sm:$0xff] %vm1731_vm6, %v1301_v24 }
 0x30e   : > { %1838 = vst.msk [vmem:[%s3033_s12 + $0x358] sm:$0xff] %vm1731_vm6, %v1547_v49 }
 0x30f   : > { %v1305_v52 = vpop.f32.mrb[28].mxu0 }
 0x310   : > { %v1551_v21 = vpop.f32.mrb[26].mxu1  ;;  %1757 = vst [vmem:[%s3033_s12 + $0xd0] sm:$0xff] %v1305_v52  ;;  %v1307_v53 = vpop.f32.mrb[29].mxu0 }
 0x311   : > { %1839 = vst [vmem:[%s3033_s12 + $0x360] sm:$0xff] %v1551_v21  ;;  %v1553_v54 = vpop.f32.mrb[27].mxu1  ;;  %1758 = vst.msk [vmem:[%s3033_s12 + $0xd8] sm:$0xff] %vm1731_vm6, %v1307_v53 }
 0x312   : > { %1840 = vst.msk [vmem:[%s3033_s12 + $0x368] sm:$0xff] %vm1731_vm6, %v1553_v54 }
 0x313   : > { %v1311_v12 = vpop.f32.mrb[30].mxu0 }
 0x314   : > { %v1557_v33 = vpop.f32.mrb[28].mxu1  ;;  %1759 = vst [vmem:[%s3033_s12 + $0xe0] sm:$0xff] %v1311_v12  ;;  %v1313_v36 = vpop.f32.mrb[31].mxu0 }
 0x315   : > { %1841 = vst [vmem:[%s3033_s12 + $0x370] sm:$0xff] %v1557_v33  ;;  %v1559_v37 = vpop.f32.mrb[29].mxu1  ;;  %1760 = vst.msk [vmem:[%s3033_s12 + $0xe8] sm:$0xff] %vm1731_vm6, %v1313_v36 }
 0x316   : > { %1842 = vst.msk [vmem:[%s3033_s12 + $0x378] sm:$0xff] %vm1731_vm6, %v1559_v37 }
 0x317   : > { %v1317_v38 = vpop.f32.mrb[32].mxu0 }
 0x318   : > { %v1563_v42 = vpop.f32.mrb[30].mxu1  ;;  %1761 = vst [vmem:[%s3033_s12 + $0xf0] sm:$0xff] %v1317_v38  ;;  %v1319_v44 = vpop.f32.mrb[33].mxu0 }
 0x319   : > { %1843 = vst [vmem:[%s3033_s12 + $0x380] sm:$0xff] %v1563_v42  ;;  %v1565_v45 = vpop.f32.mrb[31].mxu1  ;;  %1762 = vst.msk [vmem:[%s3033_s12 + $0xf8] sm:$0xff] %vm1731_vm6, %v1319_v44 }
 0x31a   : > { %1844 = vst.msk [vmem:[%s3033_s12 + $0x388] sm:$0xff] %vm1731_vm6, %v1565_v45 }
 0x31b   : > { %v1323_v13 = vpop.f32.mrb[34].mxu0 }
 0x31c   : > { %v1569_v46 = vpop.f32.mrb[32].mxu1  ;;  %1763 = vst [vmem:[%s3033_s12 + $0x100] sm:$0xff] %v1323_v13  ;;  %v1325_v47 = vpop.f32.mrb[35].mxu0 }
 0x31d   : > { %1845 = vst [vmem:[%s3033_s12 + $0x390] sm:$0xff] %v1569_v46  ;;  %v1571_v39 = vpop.f32.mrb[33].mxu1  ;;  %1764 = vst.msk [vmem:[%s3033_s12 + $0x108] sm:$0xff] %vm1731_vm6, %v1325_v47 }
 0x31e   : > { %1846 = vst.msk [vmem:[%s3033_s12 + $0x398] sm:$0xff] %vm1731_vm6, %v1571_v39 }
 0x31f   : > { %v1329_v56 = vpop.f32.mrb[36].mxu0 }
 0x320   : > { %v1575_v50 = vpop.f32.mrb[34].mxu1  ;;  %1765 = vst [vmem:[%s3033_s12 + $0x110] sm:$0xff] %v1329_v56  ;;  %v1331_v51 = vpop.f32.mrb[37].mxu0 }
 0x321   : > { %1847 = vst [vmem:[%s3033_s12 + $0x3a0] sm:$0xff] %v1575_v50  ;;  %v1577_v4 = vpop.f32.mrb[35].mxu1  ;;  %1766 = vst.msk [vmem:[%s3033_s12 + $0x118] sm:$0xff] %vm1731_vm6, %v1331_v51 }
 0x322   : > { %1848 = vst.msk [vmem:[%s3033_s12 + $0x3a8] sm:$0xff] %vm1731_vm6, %v1577_v4 }
 0x323   : > { %v1335_v55 = vpop.f32.mrb[38].mxu0 }
 0x324   : > { %v1581_v16 = vpop.f32.mrb[36].mxu1  ;;  %1767 = vst [vmem:[%s3033_s12 + $0x120] sm:$0xff] %v1335_v55  ;;  %v1337_v57 = vpop.f32.mrb[39].mxu0 }
 0x325   : > { %1849 = vst [vmem:[%s3033_s12 + $0x3b0] sm:$0xff] %v1581_v16  ;;  %v1583_v58 = vpop.f32.mrb[37].mxu1  ;;  %1768 = vst.msk [vmem:[%s3033_s12 + $0x128] sm:$0xff] %vm1731_vm6, %v1337_v57 }
 0x326   : > { %1850 = vst.msk [vmem:[%s3033_s12 + $0x3b8] sm:$0xff] %vm1731_vm6, %v1583_v58 }
 0x327   : > { %v1341_v60 = vpop.f32.mrb[40].mxu0 }
 0x328   : > { %v1587_v0 = vpop.f32.mrb[38].mxu1  ;;  %1769 = vst [vmem:[%s3033_s12 + $0x130] sm:$0xff] %v1341_v60  ;;  %v1343_v61 = vpop.f32.mrb[41].mxu0 }
 0x329   : > { %1851 = vst [vmem:[%s3033_s12 + $0x3c0] sm:$0xff] %v1587_v0  ;;  %v1589_v10 = vpop.f32.mrb[39].mxu1  ;;  %1770 = vst.msk [vmem:[%s3033_s12 + $0x138] sm:$0xff] %vm1731_vm6, %v1343_v61 }
 0x32a   : > { %1852 = vst.msk [vmem:[%s3033_s12 + $0x3c8] sm:$0xff] %vm1731_vm6, %v1589_v10 }
 0x32b   : > { %v1347_v62 = vpop.f32.mrb[42].mxu0 }
 0x32c   : > { %v1593_v63 = vpop.f32.mrb[40].mxu1  ;;  %1771 = vst [vmem:[%s3033_s12 + $0x140] sm:$0xff] %v1347_v62  ;;  %v1349_v1 = vpop.f32.mrb[43].mxu0 }
 0x32d   : > { %1853 = vst [vmem:[%s3033_s12 + $0x3d0] sm:$0xff] %v1593_v63  ;;  %v1595_v2 = vpop.f32.mrb[41].mxu1  ;;  %1772 = vst.msk [vmem:[%s3033_s12 + $0x148] sm:$0xff] %vm1731_vm6, %v1349_v1 }
 0x32e   : > { %1854 = vst.msk [vmem:[%s3033_s12 + $0x3d8] sm:$0xff] %vm1731_vm6, %v1595_v2 }
 0x32f   : > { %v1353_v23 = vpop.f32.mrb[44].mxu0 }
 0x330   : > { %v1599_v3 = vpop.f32.mrb[42].mxu1  ;;  %1773 = vst [vmem:[%s3033_s12 + $0x150] sm:$0xff] %v1353_v23  ;;  %v1355_v5 = vpop.f32.mrb[45].mxu0 }
 0x331   : > { %1855 = vst [vmem:[%s3033_s12 + $0x3e0] sm:$0xff] %v1599_v3  ;;  %v1601_v8 = vpop.f32.mrb[43].mxu1  ;;  %1774 = vst.msk [vmem:[%s3033_s12 + $0x158] sm:$0xff] %vm1731_vm6, %v1355_v5 }
 0x332   : > { %1856 = vst.msk [vmem:[%s3033_s12 + $0x3e8] sm:$0xff] %vm1731_vm6, %v1601_v8 }
 0x333   : > { %v1359_v9 = vpop.f32.mrb[46].mxu0 }
 0x334   : > { %v1605_v6 = vpop.f32.mrb[44].mxu1  ;;  %1775 = vst [vmem:[%s3033_s12 + $0x160] sm:$0xff] %v1359_v9  ;;  %v1361_v7 = vpop.f32.mrb[47].mxu0 }
 0x335   : > { %1857 = vst [vmem:[%s3033_s12 + $0x3f0] sm:$0xff] %v1605_v6  ;;  %v1607_v17 = vpop.f32.mrb[45].mxu1  ;;  %1776 = vst.msk [vmem:[%s3033_s12 + $0x168] sm:$0xff] %vm1731_vm6, %v1361_v7 }
 0x336   : > { %1858 = vst.msk [vmem:[%s3033_s12 + $0x3f8] sm:$0xff] %vm1731_vm6, %v1607_v17 }
 0x337   : > { %v1365_v11 = vpop.f32.mrb[48].mxu0 }
 0x338   : > { %v1611_v14 = vpop.f32.mrb[46].mxu1  ;;  %1777 = vst [vmem:[%s3033_s12 + $0x170] sm:$0xff] %v1365_v11  ;;  %v1367_v15 = vpop.f32.mrb[49].mxu0 }
 0x339   : > { %1859 = vst [vmem:[%s3033_s12 + $0x400] sm:$0xff] %v1611_v14  ;;  %v1613_v18 = vpop.f32.mrb[47].mxu1  ;;  %1778 = vst.msk [vmem:[%s3033_s12 + $0x178] sm:$0xff] %vm1731_vm6, %v1367_v15 }
 0x33a   : > { %1860 = vst.msk [vmem:[%s3033_s12 + $0x408] sm:$0xff] %vm1731_vm6, %v1613_v18 }
 0x33b   : > { %v1371_v19 = vpop.f32.mrb[50].mxu0 }
 0x33c   : > { %v1617_v22 = vpop.f32.mrb[48].mxu1  ;;  %1779 = vst [vmem:[%s3033_s12 + $0x180] sm:$0xff] %v1371_v19  ;;  %v1373_v26 = vpop.f32.mrb[51].mxu0 }
 0x33d   : > { %1861 = vst [vmem:[%s3033_s12 + $0x410] sm:$0xff] %v1617_v22  ;;  %v1619_v27 = vpop.f32.mrb[49].mxu1  ;;  %1780 = vst.msk [vmem:[%s3033_s12 + $0x188] sm:$0xff] %vm1731_vm6, %v1373_v26 }
 0x33e   : > { %1862 = vst.msk [vmem:[%s3033_s12 + $0x418] sm:$0xff] %vm1731_vm6, %v1619_v27 }
 0x33f   : > { %v1377_v28 = vpop.f32.mrb[52].mxu0 }
 0x340   : > { %v1623_v20 = vpop.f32.mrb[50].mxu1  ;;  %1781 = vst [vmem:[%s3033_s12 + $0x190] sm:$0xff] %v1377_v28  ;;  %v1379_v29 = vpop.f32.mrb[53].mxu0 }
 0x341   : > { %1863 = vst [vmem:[%s3033_s12 + $0x420] sm:$0xff] %v1623_v20  ;;  %v1625_v30 = vpop.f32.mrb[51].mxu1  ;;  %1782 = vst.msk [vmem:[%s3033_s12 + $0x198] sm:$0xff] %vm1731_vm6, %v1379_v29 }
 0x342   : > { %1864 = vst.msk [vmem:[%s3033_s12 + $0x428] sm:$0xff] %vm1731_vm6, %v1625_v30 }
 0x343   : > { %v1383_v25 = vpop.f32.mrb[54].mxu0 }
 0x344   : > { %v1629_v34 = vpop.f32.mrb[52].mxu1  ;;  %1783 = vst [vmem:[%s3033_s12 + $0x1a0] sm:$0xff] %v1383_v25  ;;  %v1385_v32 = vpop.f32.mrb[55].mxu0 }
 0x345   : > { %1865 = vst [vmem:[%s3033_s12 + $0x430] sm:$0xff] %v1629_v34  ;;  %v1631_v31 = vpop.f32.mrb[53].mxu1  ;;  %1784 = vst.msk [vmem:[%s3033_s12 + $0x1a8] sm:$0xff] %vm1731_vm6, %v1385_v32 }
 0x346   : > { %1866 = vst.msk [vmem:[%s3033_s12 + $0x438] sm:$0xff] %vm1731_vm6, %v1631_v31 }
 0x347   : > { %v1389_v35 = vpop.f32.mrb[56].mxu0 }
 0x348   : > { %v1635_v41 = vpop.f32.mrb[54].mxu1  ;;  %1785 = vst [vmem:[%s3033_s12 + $0x1b0] sm:$0xff] %v1389_v35  ;;  %v1391_v40 = vpop.f32.mrb[57].mxu0 }
 0x349   : > { %1867 = vst [vmem:[%s3033_s12 + $0x440] sm:$0xff] %v1635_v41  ;;  %v1637_v43 = vpop.f32.mrb[55].mxu1  ;;  %1786 = vst.msk [vmem:[%s3033_s12 + $0x1b8] sm:$0xff] %vm1731_vm6, %v1391_v40 }
 0x34a   : > { %1868 = vst.msk [vmem:[%s3033_s12 + $0x448] sm:$0xff] %vm1731_vm6, %v1637_v43 }
 0x34b   : > { %v1395_v59 = vpop.f32.mrb[58].mxu0 }
 0x34c   : > { %v1641_v48 = vpop.f32.mrb[56].mxu1  ;;  %1787 = vst [vmem:[%s3033_s12 + $0x1c0] sm:$0xff] %v1395_v59  ;;  %v1397_v24 = vpop.f32.mrb[59].mxu0 }
 0x34d   : > { %1869 = vst [vmem:[%s3033_s12 + $0x450] sm:$0xff] %v1641_v48  ;;  %v1643_v49 = vpop.f32.mrb[57].mxu1  ;;  %1788 = vst.msk [vmem:[%s3033_s12 + $0x1c8] sm:$0xff] %vm1731_vm6, %v1397_v24 }
 0x34e   : > { %1870 = vst.msk [vmem:[%s3033_s12 + $0x458] sm:$0xff] %vm1731_vm6, %v1643_v49 }
 0x34f   : > { %v1401_v52 = vpop.f32.mrb[60].mxu0 }
 0x350   : > { %v1647_v21 = vpop.f32.mrb[58].mxu1  ;;  %1789 = vst [vmem:[%s3033_s12 + $0x1d0] sm:$0xff] %v1401_v52  ;;  %v1403_v53 = vpop.f32.mrb[61].mxu0 }
 0x351   : > { %1871 = vst [vmem:[%s3033_s12 + $0x460] sm:$0xff] %v1647_v21  ;;  %v1649_v54 = vpop.f32.mrb[59].mxu1  ;;  %1790 = vst.msk [vmem:[%s3033_s12 + $0x1d8] sm:$0xff] %vm1731_vm6, %v1403_v53 }
 0x352   : > { %1872 = vst.msk [vmem:[%s3033_s12 + $0x468] sm:$0xff] %vm1731_vm6, %v1649_v54 }
 0x353   : > { %v1407_v12 = vpop.f32.mrb[62].mxu0 }
 0x354   : > { %v1653_v33 = vpop.f32.mrb[60].mxu1  ;;  %1791 = vst [vmem:[%s3033_s12 + $0x1e0] sm:$0xff] %v1407_v12  ;;  %v1409_v36 = vpop.f32.mrb[63].mxu0 }
 0x355   : > { %1873 = vst [vmem:[%s3033_s12 + $0x470] sm:$0xff] %v1653_v33  ;;  %v1655_v37 = vpop.f32.mrb[61].mxu1  ;;  %1792 = vst.msk [vmem:[%s3033_s12 + $0x1e8] sm:$0xff] %vm1731_vm6, %v1409_v36 }
 0x356   : > { %1874 = vst.msk [vmem:[%s3033_s12 + $0x478] sm:$0xff] %vm1731_vm6, %v1655_v37 }
 0x357   : > { %v1413_v38 = vpop.f32.mrb[64].mxu0 }
 0x358   : > { %v1659_v42 = vpop.f32.mrb[62].mxu1  ;;  %1793 = vst [vmem:[%s3033_s12 + $0x1f0] sm:$0xff] %v1413_v38  ;;  %v1415_v44 = vpop.f32.mrb[65].mxu0 }
 0x359   : > { %1875 = vst [vmem:[%s3033_s12 + $0x480] sm:$0xff] %v1659_v42  ;;  %v1661_v45 = vpop.f32.mrb[63].mxu1  ;;  %1794 = vst.msk [vmem:[%s3033_s12 + $0x1f8] sm:$0xff] %vm1731_vm6, %v1415_v44 }
 0x35a   : > { %1876 = vst.msk [vmem:[%s3033_s12 + $0x488] sm:$0xff] %vm1731_vm6, %v1661_v45 }
 0x35b   : > { %v1419_v13 = vpop.f32.mrb[66].mxu0 }
 0x35c   : > { %v1665_v46 = vpop.f32.mrb[64].mxu1  ;;  %1795 = vst [vmem:[%s3033_s12 + $0x200] sm:$0xff] %v1419_v13  ;;  %v1421_v47 = vpop.f32.mrb[67].mxu0 }
 0x35d   : > { %1877 = vst [vmem:[%s3033_s12 + $0x490] sm:$0xff] %v1665_v46  ;;  %v1667_v39 = vpop.f32.mrb[65].mxu1  ;;  %1796 = vst.msk [vmem:[%s3033_s12 + $0x208] sm:$0xff] %vm1731_vm6, %v1421_v47 }
 0x35e   : > { %1878 = vst.msk [vmem:[%s3033_s12 + $0x498] sm:$0xff] %vm1731_vm6, %v1667_v39 }
 0x35f   : > { %v1425_v56 = vpop.f32.mrb[68].mxu0 }
 0x360   : > { %v1671_v50 = vpop.f32.mrb[66].mxu1  ;;  %1797 = vst [vmem:[%s3033_s12 + $0x210] sm:$0xff] %v1425_v56  ;;  %v1427_v51 = vpop.f32.mrb[69].mxu0 }
 0x361   : > { %1879 = vst [vmem:[%s3033_s12 + $0x4a0] sm:$0xff] %v1671_v50  ;;  %v1673_v4 = vpop.f32.mrb[67].mxu1  ;;  %1798 = vst.msk [vmem:[%s3033_s12 + $0x218] sm:$0xff] %vm1731_vm6, %v1427_v51 }
 0x362   : > { %1880 = vst.msk [vmem:[%s3033_s12 + $0x4a8] sm:$0xff] %vm1731_vm6, %v1673_v4 }
 0x363   : > { %v1431_v55 = vpop.f32.mrb[70].mxu0 }
 0x364   : > { %v1677_v16 = vpop.f32.mrb[68].mxu1  ;;  %1799 = vst [vmem:[%s3033_s12 + $0x220] sm:$0xff] %v1431_v55  ;;  %v1433_v57 = vpop.f32.mrb[71].mxu0 }
 0x365   : > { %1881 = vst [vmem:[%s3033_s12 + $0x4b0] sm:$0xff] %v1677_v16  ;;  %v1679_v58 = vpop.f32.mrb[69].mxu1  ;;  %1800 = vst.msk [vmem:[%s3033_s12 + $0x228] sm:$0xff] %vm1731_vm6, %v1433_v57 }
 0x366   : > { %1882 = vst.msk [vmem:[%s3033_s12 + $0x4b8] sm:$0xff] %vm1731_vm6, %v1679_v58 }
 0x367   : > { %v1437_v60 = vpop.f32.mrb[72].mxu0 }
 0x368   : > { %v1683_v0 = vpop.f32.mrb[70].mxu1  ;;  %1801 = vst [vmem:[%s3033_s12 + $0x230] sm:$0xff] %v1437_v60  ;;  %v1439_v61 = vpop.f32.mrb[73].mxu0 }
 0x369   : > { %1883 = vst [vmem:[%s3033_s12 + $0x4c0] sm:$0xff] %v1683_v0  ;;  %v1685_v10 = vpop.f32.mrb[71].mxu1  ;;  %1802 = vst.msk [vmem:[%s3033_s12 + $0x238] sm:$0xff] %vm1731_vm6, %v1439_v61 }
 0x36a   : > { %1884 = vst.msk [vmem:[%s3033_s12 + $0x4c8] sm:$0xff] %vm1731_vm6, %v1685_v10 }
 0x36b   : > { %v1443_v62 = vpop.f32.mrb[74].mxu0 }
 0x36c   : > { %v1689_v63 = vpop.f32.mrb[72].mxu1  ;;  %1803 = vst [vmem:[%s3033_s12 + $0x240] sm:$0xff] %v1443_v62  ;;  %v1445_v1 = vpop.f32.mrb[75].mxu0 }
 0x36d   : > { %1885 = vst [vmem:[%s3033_s12 + $0x4d0] sm:$0xff] %v1689_v63  ;;  %v1691_v2 = vpop.f32.mrb[73].mxu1  ;;  %1804 = vst.msk [vmem:[%s3033_s12 + $0x248] sm:$0xff] %vm1731_vm6, %v1445_v1 }
 0x36e   : > { %1886 = vst.msk [vmem:[%s3033_s12 + $0x4d8] sm:$0xff] %vm1731_vm6, %v1691_v2 }
 0x36f   : > { %v1449_v23 = vpop.f32.mrb[76].mxu0 }
 0x370   : > { %v1695_v3 = vpop.f32.mrb[74].mxu1  ;;  %1805 = vst [vmem:[%s3033_s12 + $0x250] sm:$0xff] %v1449_v23  ;;  %v1451_v5 = vpop.f32.mrb[77].mxu0 }
 0x371   : > { %1887 = vst [vmem:[%s3033_s12 + $0x4e0] sm:$0xff] %v1695_v3  ;;  %v1697_v8 = vpop.f32.mrb[75].mxu1  ;;  %1806 = vst.msk [vmem:[%s3033_s12 + $0x258] sm:$0xff] %vm1731_vm6, %v1451_v5 }
 0x372   : > { %1888 = vst.msk [vmem:[%s3033_s12 + $0x4e8] sm:$0xff] %vm1731_vm6, %v1697_v8 }
 0x373   : > { %v1455_v9 = vpop.f32.mrb[78].mxu0 }
 0x374   : > { %v1701_v6 = vpop.f32.mrb[76].mxu1  ;;  %1807 = vst [vmem:[%s3033_s12 + $0x260] sm:$0xff] %v1455_v9  ;;  %v1457_v7 = vpop.f32.mrb[79].mxu0 }
 0x375   : > { %1889 = vst [vmem:[%s3033_s12 + $0x4f0] sm:$0xff] %v1701_v6  ;;  %v1703_v17 = vpop.f32.mrb[77].mxu1  ;;  %1808 = vst.msk [vmem:[%s3033_s12 + $0x268] sm:$0xff] %vm1731_vm6, %v1457_v7 }
 0x376   : > { %1890 = vst.msk [vmem:[%s3033_s12 + $0x4f8] sm:$0xff] %vm1731_vm6, %v1703_v17 }
 0x377   : > { %v1461_v11 = vpop.f32.mrb[80].mxu0 }
 0x378   : > { %v1707_v14 = vpop.f32.mrb[78].mxu1  ;;  %1809 = vst [vmem:[%s3033_s12 + $0x270] sm:$0xff] %v1461_v11  ;;  %v1463_v15 = vpop.f32.mrb[81].mxu0 }
 0x379   : > { %1891 = vst [vmem:[%s3033_s12 + $0x500] sm:$0xff] %v1707_v14  ;;  %v1709_v18 = vpop.f32.mrb[79].mxu1  ;;  %1810 = vst.msk [vmem:[%s3033_s12 + $0x278] sm:$0xff] %vm1731_vm6, %v1463_v15 }
 0x37a   : > { %1892 = vst.msk [vmem:[%s3033_s12 + $0x508] sm:$0xff] %vm1731_vm6, %v1709_v18 }
 0x37b   : > { %v1467_v19 = vpop.f32.mrb[82].mxu0 }
 0x37c   : > { %v1713_v22 = vpop.f32.mrb[80].mxu1  ;;  %1811 = vst [vmem:[%s3033_s12 + $0x280] sm:$0xff] %v1467_v19  ;;  %v1469_v26 = vpop.f32.mrb[83].mxu0 }
 0x37d   : > { %1893 = vst [vmem:[%s3033_s12 + $0x510] sm:$0xff] %v1713_v22  ;;  %v1715_v27 = vpop.f32.mrb[81].mxu1  ;;  %1812 = vst.msk [vmem:[%s3033_s12 + $0x288] sm:$0xff] %vm1731_vm6, %v1469_v26 }
 0x37e   : > { %1894 = vst.msk [vmem:[%s3033_s12 + $0x518] sm:$0xff] %vm1731_vm6, %v1715_v27 }
 0x380   : > { %v1719_v28 = vpop.f32.mrb[82].mxu1 }
 0x381   : > { %1895 = vst [vmem:[%s3033_s12 + $0x520] sm:$0xff] %v1719_v28  ;;  %v1721_v20 = vpop.f32.mrb[83].mxu1 }
 0x382   : > { %1896 = vst.msk [vmem:[%s3033_s12 + $0x528] sm:$0xff] %vm1731_vm6, %v1721_v20 }
 0x384   : > { %v1725_v29 = vpop.f32.mrb[84].mxu1 }
 0x385   : > { %1897 = vst [vmem:[%s3033_s12 + $0x530] sm:$0xff] %v1725_v29  ;;  %v1727_v30 = vpop.f32.mrb[85].mxu1 }
 0x386   : > { %1898 = vst.msk [vmem:[%s3033_s12 + $0x538] sm:$0xff] %vm1731_vm6, %v1727_v30 }
 0x387 PF: > { %s19_s24 = sadd.s32 1, %s2244_s24  }
 0x388   : > { %p16_p10 = scmp.ge.s32.totalorder %s19_s24, 4  }
 0x38a   :  { %18 = sbr.rel (!%p16_p10) target bundleno = 2 (0x2), region = 87 }
 0x391   :  { %1923 = vsyncpa [#allocation4], 1 }
 0x392   :  { %1925 = vsyncpa [#allocation4 + $0x1], 1 }
 0x393   :  { %1926 = vsyncpa [#allocation6], 1 }

</bundles_post_ra>
